<compile_context>
chip_gen: v6e
topology: v6e:2x2x1
jax: 0.10.0
libtpu: 0.0.40
codegen_flags: <defaults>
</compile_context>

<pallas_src>
import functools

import jax
import jax.numpy as jnp
import numpy as np
from jax.experimental import pallas as pl
from jax.experimental.pallas import tpu as pltpu

SEED_DIM = 100
LABEL_DIM = 10
IN_DIM = SEED_DIM + LABEL_DIM      # 110
HID_DIM = 200
OUT_DIM = 784
LN_EPS = 1e-5
LRELU_SLOPE = 0.02

# Lane-aligned (multiple-of-128) padded feature dims.
IN_PAD = 128
HID_PAD = 256
OUT_PAD = 896


def _round_up(x, m):
    return (x + m - 1) // m * m


def _generator_kernel(x_ref, w1_ref, b1_ref, g_ref, beta_ref, w2_ref, b2_ref, o_ref):
    # x: (bt, IN_PAD) bf16; weights bf16; biases/affine f32.
    # All padded feature columns/rows are zero by construction.
    x = x_ref[...]

    # Linear(110 -> 200): bf16 operands, f32 accumulation on the MXU.
    h = jnp.dot(x, w1_ref[...], preferred_element_type=jnp.float32) + b1_ref[...]

    # LeakyReLU(0.02). Padded columns stay exactly 0.
    h = jnp.where(h > 0, h, LRELU_SLOPE * h)

    # LayerNorm over the *real* 200 features (biased variance, eps=1e-5, affine).
    # Padded columns of h are 0, so the sum is already only over real features;
    # centered values must be masked before the variance sum.
    mean = jnp.sum(h, axis=-1, keepdims=True) * (1.0 / HID_DIM)
    feat_mask = jax.lax.broadcasted_iota(jnp.int32, (1, HID_PAD), 1) < HID_DIM
    centered = jnp.where(feat_mask, h - mean, 0.0)
    var = jnp.sum(centered * centered, axis=-1, keepdims=True) * (1.0 / HID_DIM)
    hn = centered * jax.lax.rsqrt(var + LN_EPS)
    hn = hn * g_ref[...] + beta_ref[...]       # padded gamma/beta are 0 -> pads stay 0

    # Linear(200 -> 784): bf16 operands, f32 accumulation.
    y = jnp.dot(hn.astype(jnp.bfloat16), w2_ref[...],
                preferred_element_type=jnp.float32) + b2_ref[...]

    # Sigmoid: exp on the EUP, divide replaced by EUP approx reciprocal.
    o_ref[...] = pl.reciprocal(1.0 + jnp.exp(-y), approx=True)


@functools.partial(jax.jit, static_argnames=("block_b",))
def _generator_forward_padded(x_pad, pp, block_b):
    b_pad = x_pad.shape[0]
    grid = (b_pad // block_b,)

    flops = 2 * b_pad * (IN_PAD * HID_PAD + HID_PAD * OUT_PAD)
    bytes_accessed = (
        x_pad.size * 2                                # bf16 activations in
        + (pp["w1"].size + pp["w2"].size) * 2         # bf16 weights
        + (pp["b1"].size + pp["gamma"].size + pp["beta"].size + pp["b2"].size) * 4
        + b_pad * OUT_PAD * 4                         # f32 output
    )

    return pl.pallas_call(
        _generator_kernel,
        out_shape=jax.ShapeDtypeStruct((b_pad, OUT_PAD), jnp.float32),
        grid=grid,
        in_specs=[
            pl.BlockSpec((block_b, IN_PAD), lambda i: (i, 0)),     # x tile per step
            pl.BlockSpec((IN_PAD, HID_PAD), lambda i: (0, 0)),     # w1 (VMEM-resident)
            pl.BlockSpec((1, HID_PAD), lambda i: (0, 0)),          # b1
            pl.BlockSpec((1, HID_PAD), lambda i: (0, 0)),          # gamma
            pl.BlockSpec((1, HID_PAD), lambda i: (0, 0)),          # beta
            pl.BlockSpec((HID_PAD, OUT_PAD), lambda i: (0, 0)),    # w2 (VMEM-resident)
            pl.BlockSpec((1, OUT_PAD), lambda i: (0, 0)),          # b2
        ],
        out_specs=pl.BlockSpec((block_b, OUT_PAD), lambda i: (i, 0)),
        compiler_params=pltpu.CompilerParams(dimension_semantics=("parallel",)),
        cost_estimate=pl.CostEstimate(
            flops=flops, transcendentals=b_pad * OUT_PAD, bytes_accessed=bytes_accessed),
    )(x_pad, pp["w1"], pp["b1"], pp["gamma"], pp["beta"], pp["w2"], pp["b2"])


def generator_forward(seed_tensor, label_tensor, padded_params, *, block_b=256):
    """seed: (B,100) or (100,), label: (B,10) or (10,) -> (B,784) or (784,)."""
    squeeze = seed_tensor.ndim == 1
    if squeeze:
        seed_tensor = seed_tensor[None]
        label_tensor = label_tensor[None]
    b = seed_tensor.shape[0]

    bt = _round_up(min(block_b, _round_up(b, 8)), 8)
    b_pad = _round_up(b, bt)

    # Concat + pad + cast is a single small XLA fusion, amortized over the batch.
    x = jnp.concatenate([seed_tensor, label_tensor], axis=-1)
    x_pad = jnp.pad(x, ((0, b_pad - b), (0, IN_PAD - IN_DIM))).astype(jnp.bfloat16)

    out = _generator_forward_padded(x_pad, padded_params, block_b=bt)
    out = out[:b, :OUT_DIM]
    return out[0] if squeeze else out


def init_params(key):
    """Raw f32 params mimicking PyTorch nn.Linear defaults (U(-1/sqrt(fan_in), +))."""
    k1, k2, k3, k4 = jax.random.split(key, 4)
    bound1 = 1.0 / np.sqrt(IN_DIM)
    bound2 = 1.0 / np.sqrt(HID_DIM)
    return {
        "w1": jax.random.uniform(k1, (IN_DIM, HID_DIM), jnp.float32, -bound1, bound1),
        "b1": jax.random.uniform(k2, (HID_DIM,), jnp.float32, -bound1, bound1),
        "gamma": jnp.ones((HID_DIM,), jnp.float32),
        "beta": jnp.zeros((HID_DIM,), jnp.float32),
        "w2": jax.random.uniform(k3, (HID_DIM, OUT_DIM), jnp.float32, -bound2, bound2),
        "b2": jax.random.uniform(k4, (OUT_DIM,), jnp.float32, -bound2, bound2),
    }


def prepare_params(raw):
    """Zero-pad once to lane-aligned shapes; weights cast to bf16, small vecs stay f32."""
    w1 = jnp.pad(raw["w1"], ((0, IN_PAD - IN_DIM), (0, HID_PAD - HID_DIM)))
    w2 = jnp.pad(raw["w2"], ((0, HID_PAD - HID_DIM), (0, OUT_PAD - OUT_DIM)))
    pad_h = (0, HID_PAD - HID_DIM)
    pad_o = (0, OUT_PAD - OUT_DIM)
    return {
        "w1": w1.astype(jnp.bfloat16),
        "b1": jnp.pad(raw["b1"], pad_h).reshape(1, HID_PAD).astype(jnp.float32),
        "gamma": jnp.pad(raw["gamma"], pad_h).reshape(1, HID_PAD).astype(jnp.float32),
        "beta": jnp.pad(raw["beta"], pad_h).reshape(1, HID_PAD).astype(jnp.float32),
        "w2": w2.astype(jnp.bfloat16),
        "b2": jnp.pad(raw["b2"], pad_o).reshape(1, OUT_PAD).astype(jnp.float32),
    }


def _reference_forward_f32(seed, label, params):
    x = jnp.concatenate([seed, label], axis=-1)
    h = x @ params["w1"] + params["b1"]
    h = jnp.where(h > 0, h, LRELU_SLOPE * h)
    mean = jnp.mean(h, axis=-1, keepdims=True)
    var = jnp.mean((h - mean) ** 2, axis=-1, keepdims=True)
    h = (h - mean) / jnp.sqrt(var + LN_EPS)
    h = h * params["gamma"] + params["beta"]
    y = h @ params["w2"] + params["b2"]
    return jax.nn.sigmoid(y)


def _reference_forward_mixed(seed, label, params):
    """Same math with the kernel's bf16-weight / f32-accumulate precision policy."""
    x = jnp.concatenate([seed, label], axis=-1).astype(jnp.bfloat16)
    h = jnp.dot(x, params["w1"].astype(jnp.bfloat16),
                preferred_element_type=jnp.float32) + params["b1"]
    h = jnp.where(h > 0, h, LRELU_SLOPE * h)
    mean = jnp.mean(h, axis=-1, keepdims=True)
    c = h - mean
    var = jnp.mean(c * c, axis=-1, keepdims=True)
    hn = c * jax.lax.rsqrt(var + LN_EPS) * params["gamma"] + params["beta"]
    y = jnp.dot(hn.astype(jnp.bfloat16), params["w2"].astype(jnp.bfloat16),
                preferred_element_type=jnp.float32) + params["b2"]
    return jax.nn.sigmoid(y)


if __name__ == "__main__":
    key = jax.random.PRNGKey(0)
    kp, ks, kl = jax.random.split(key, 3)

    raw_params = init_params(kp)
    padded_params = prepare_params(raw_params)

    B = 64
    seed_tensor = jax.random.normal(ks, (B, SEED_DIM), jnp.float32)
    labels = jax.random.randint(kl, (B,), 0, LABEL_DIM)
    label_tensor = jax.nn.one_hot(labels, LABEL_DIM, dtype=jnp.float32)

    # Batched call; block_b=32 gives a 2-step "parallel" grid at this small demo size.
    out = generator_forward(seed_tensor, label_tensor, padded_params, block_b=32)
    out = jax.block_until_ready(out)
    assert out.shape == (B, OUT_DIM)

    # Tight check vs. a reference using the same bf16/f32 precision policy
    # (tolerance absorbs the EUP approx-reciprocal in the sigmoid epilogue).
    ref_mixed = _reference_forward_mixed(seed_tensor, label_tensor, raw_params)
    np.testing.assert_allclose(np.asarray(out), np.asarray(ref_mixed), rtol=0, atol=1e-2)

    # Looser check vs. the pure-f32 PyTorch-equivalent math.
    ref_f32 = _reference_forward_f32(seed_tensor, label_tensor, raw_params)
    np.testing.assert_allclose(np.asarray(out), np.asarray(ref_f32), rtol=0, atol=3e-2)

    # Unbatched path (matches the torch forward signature: 1-D seed/label -> (784,)).
    out1 = generator_forward(seed_tensor[0], label_tensor[0], padded_params)
    out1 = jax.block_until_ready(out1)
    assert out1.shape == (OUT_DIM,)

    print("KERNEL_OK")
</pallas_src>

<mosaic_0001>
module attributes {stable_mosaic.version = 11 : i64} {
  func.func @_generator_kernel(%arg0: i32, %arg1: memref<32x128xbf16, #tpu.memory_space<vmem>>, %arg2: memref<128x256xbf16, #tpu.memory_space<vmem>>, %arg3: memref<1x256xf32, #tpu.memory_space<vmem>>, %arg4: memref<1x256xf32, #tpu.memory_space<vmem>>, %arg5: memref<1x256xf32, #tpu.memory_space<vmem>>, %arg6: memref<256x896xbf16, #tpu.memory_space<vmem>>, %arg7: memref<1x896xf32, #tpu.memory_space<vmem>>, %arg8: memref<32x896xf32, #tpu.memory_space<vmem>>) attributes {dimension_semantics = [#tpu.dimension_semantics<parallel>], iteration_bounds = array<i64: 2>, scalar_prefetch = 0 : i64, scratch_operands = 0 : i64, tpu.core_type = #tpu.core_type<tc>, window_params = [{transform_indices = @transform_0, window_bounds = array<i64: 32, 128>}, {pipeline_mode = #tpu.pipeline_mode<synchronous>, transform_indices = @transform_1, window_bounds = array<i64: 128, 256>}, {pipeline_mode = #tpu.pipeline_mode<synchronous>, transform_indices = @transform_2, window_bounds = array<i64: 1, 256>}, {pipeline_mode = #tpu.pipeline_mode<synchronous>, transform_indices = @transform_3, window_bounds = array<i64: 1, 256>}, {pipeline_mode = #tpu.pipeline_mode<synchronous>, transform_indices = @transform_4, window_bounds = array<i64: 1, 256>}, {pipeline_mode = #tpu.pipeline_mode<synchronous>, transform_indices = @transform_5, window_bounds = array<i64: 256, 896>}, {pipeline_mode = #tpu.pipeline_mode<synchronous>, transform_indices = @transform_6, window_bounds = array<i64: 1, 896>}, {transform_indices = @transform_7, window_bounds = array<i64: 32, 896>}]} {
    %c0 = arith.constant 0 : index
    %c0_0 = arith.constant 0 : index
    %0 = vector.load %arg1[%c0, %c0_0] : memref<32x128xbf16, #tpu.memory_space<vmem>>, vector<32x128xbf16>
    %c0_1 = arith.constant 0 : index
    %c0_2 = arith.constant 0 : index
    %1 = vector.load %arg2[%c0_1, %c0_2] : memref<128x256xbf16, #tpu.memory_space<vmem>>, vector<128x256xbf16>
    %cst = arith.constant dense<0.000000e+00> : vector<32x256xf32>
    %2 = tpu.matmul %0, %1, %cst {dimension_numbers = #tpu.dot_dimension_numbers<[1], [0], [0], [1], [0, 0, 1, 1], [], []>} : vector<32x128xbf16>, vector<128x256xbf16>, vector<32x256xf32> -> vector<32x256xf32>
    %c0_3 = arith.constant 0 : index
    %c0_4 = arith.constant 0 : index
    %3 = vector.load %arg3[%c0_3, %c0_4] : memref<1x256xf32, #tpu.memory_space<vmem>>, vector<1x256xf32>
    %4 = vector.broadcast %3 : vector<1x256xf32> to vector<32x256xf32>
    %5 = arith.addf %2, %4 : vector<32x256xf32>
    %cst_5 = arith.constant 0.000000e+00 : f32
    %6 = vector.broadcast %cst_5 : f32 to vector<32x256xf32>
    %7 = arith.cmpf ogt, %5, %6 : vector<32x256xf32>
    %cst_6 = arith.constant 2.000000e-02 : f32
    %8 = vector.broadcast %cst_6 : f32 to vector<32x256xf32>
    %9 = arith.mulf %8, %5 : vector<32x256xf32>
    %10 = arith.select %7, %5, %9 : vector<32x256xi1>, vector<32x256xf32>
    %cst_7 = arith.constant dense<0.000000e+00> : vector<32xf32>
    %11 = vector.multi_reduction <add>, %10, %cst_7 [1] : vector<32x256xf32> to vector<32xf32>
    %12 = vector.shape_cast %11 : vector<32xf32> to vector<32x1xf32>
    %cst_8 = arith.constant 5.000000e-03 : f32
    %13 = vector.broadcast %cst_8 : f32 to vector<32x1xf32>
    %14 = arith.mulf %12, %13 : vector<32x1xf32>
    %15 = tpu.iota {dimensions = array<i32: 1>} : vector<1x256xi32>
    %c200_i32 = arith.constant 200 : i32
    %16 = vector.broadcast %c200_i32 : i32 to vector<1x256xi32>
    %17 = arith.cmpi slt, %15, %16 : vector<1x256xi32>
    %18 = vector.broadcast %14 : vector<32x1xf32> to vector<32x256xf32>
    %19 = arith.subf %10, %18 : vector<32x256xf32>
    %cst_9 = arith.constant 0.000000e+00 : f32
    %20 = vector.shape_cast %17 : vector<1x256xi1> to vector<1x256xi1>
    %21 = vector.broadcast %20 : vector<1x256xi1> to vector<32x256xi1>
    %22 = vector.broadcast %cst_9 : f32 to vector<32x256xf32>
    %23 = arith.select %21, %19, %22 : vector<32x256xi1>, vector<32x256xf32>
    %24 = arith.mulf %23, %23 : vector<32x256xf32>
    %cst_10 = arith.constant dense<0.000000e+00> : vector<32xf32>
    %25 = vector.multi_reduction <add>, %24, %cst_10 [1] : vector<32x256xf32> to vector<32xf32>
    %26 = vector.shape_cast %25 : vector<32xf32> to vector<32x1xf32>
    %cst_11 = arith.constant 5.000000e-03 : f32
    %27 = vector.broadcast %cst_11 : f32 to vector<32x1xf32>
    %28 = arith.mulf %26, %27 : vector<32x1xf32>
    %cst_12 = arith.constant 9.99999974E-6 : f32
    %29 = vector.broadcast %cst_12 : f32 to vector<32x1xf32>
    %30 = arith.addf %28, %29 : vector<32x1xf32>
    %31 = math.rsqrt %30 : vector<32x1xf32>
    %32 = vector.broadcast %31 : vector<32x1xf32> to vector<32x256xf32>
    %33 = arith.mulf %23, %32 : vector<32x256xf32>
    %c0_13 = arith.constant 0 : index
    %c0_14 = arith.constant 0 : index
    %34 = vector.load %arg4[%c0_13, %c0_14] : memref<1x256xf32, #tpu.memory_space<vmem>>, vector<1x256xf32>
    %35 = vector.broadcast %34 : vector<1x256xf32> to vector<32x256xf32>
    %36 = arith.mulf %33, %35 : vector<32x256xf32>
    %c0_15 = arith.constant 0 : index
    %c0_16 = arith.constant 0 : index
    %37 = vector.load %arg5[%c0_15, %c0_16] : memref<1x256xf32, #tpu.memory_space<vmem>>, vector<1x256xf32>
    %38 = vector.broadcast %37 : vector<1x256xf32> to vector<32x256xf32>
    %39 = arith.addf %36, %38 : vector<32x256xf32>
    %40 = arith.truncf %39 : vector<32x256xf32> to vector<32x256xbf16>
    %c0_17 = arith.constant 0 : index
    %c0_18 = arith.constant 0 : index
    %41 = vector.load %arg6[%c0_17, %c0_18] : memref<256x896xbf16, #tpu.memory_space<vmem>>, vector<256x896xbf16>
    %cst_19 = arith.constant dense<0.000000e+00> : vector<32x896xf32>
    %42 = tpu.matmul %40, %41, %cst_19 {dimension_numbers = #tpu.dot_dimension_numbers<[1], [0], [0], [1], [0, 0, 1, 1], [], []>} : vector<32x256xbf16>, vector<256x896xbf16>, vector<32x896xf32> -> vector<32x896xf32>
    %c0_20 = arith.constant 0 : index
    %c0_21 = arith.constant 0 : index
    %43 = vector.load %arg7[%c0_20, %c0_21] : memref<1x896xf32, #tpu.memory_space<vmem>>, vector<1x896xf32>
    %44 = vector.broadcast %43 : vector<1x896xf32> to vector<32x896xf32>
    %45 = arith.addf %42, %44 : vector<32x896xf32>
    %cst_22 = arith.constant 0.000000e+00 : f32
    %46 = vector.broadcast %cst_22 : f32 to vector<32x896xf32>
    %47 = arith.subf %46, %45 : vector<32x896xf32>
    %48 = math.exp %47 : vector<32x896xf32>
    %cst_23 = arith.constant 1.000000e+00 : f32
    %49 = vector.broadcast %cst_23 : f32 to vector<32x896xf32>
    %50 = arith.addf %49, %48 : vector<32x896xf32>
    %51 = tpu.reciprocal %50 {approx = true} : vector<32x896xf32> -> vector<32x896xf32>
    %c0_24 = arith.constant 0 : index
    %c0_25 = arith.constant 0 : index
    %52 = vector.load %arg8[%c0_24, %c0_25] : memref<32x896xf32, #tpu.memory_space<vmem>>, vector<32x896xf32>
    tpu.vector_store %arg8[%c0_24, %c0_25], %51 {strides = array<i32>} : memref<32x896xf32, #tpu.memory_space<vmem>>, vector<32x896xf32>,
    return
  }
  func.func @transform_0(%arg0: i32) -> (i32, i32) {
    %c0_i32 = arith.constant 0 : i32
    %c0_i32_0 = arith.constant 0 : i32
    return %arg0, %c0_i32 : i32, i32
  }
  func.func @transform_1(%arg0: i32) -> (i32, i32) {
    %c0_i32 = arith.constant 0 : i32
    %c0_i32_0 = arith.constant 0 : i32
    %c0_i32_1 = arith.constant 0 : i32
    return %c0_i32, %c0_i32_0 : i32, i32
  }
  func.func @transform_2(%arg0: i32) -> (i32, i32) {
    %c0_i32 = arith.constant 0 : i32
    %c0_i32_0 = arith.constant 0 : i32
    %c0_i32_1 = arith.constant 0 : i32
    return %c0_i32, %c0_i32_0 : i32, i32
  }
  func.func @transform_3(%arg0: i32) -> (i32, i32) {
    %c0_i32 = arith.constant 0 : i32
    %c0_i32_0 = arith.constant 0 : i32
    %c0_i32_1 = arith.constant 0 : i32
    return %c0_i32, %c0_i32_0 : i32, i32
  }
  func.func @transform_4(%arg0: i32) -> (i32, i32) {
    %c0_i32 = arith.constant 0 : i32
    %c0_i32_0 = arith.constant 0 : i32
    %c0_i32_1 = arith.constant 0 : i32
    return %c0_i32, %c0_i32_0 : i32, i32
  }
  func.func @transform_5(%arg0: i32) -> (i32, i32) {
    %c0_i32 = arith.constant 0 : i32
    %c0_i32_0 = arith.constant 0 : i32
    %c0_i32_1 = arith.constant 0 : i32
    return %c0_i32, %c0_i32_0 : i32, i32
  }
  func.func @transform_6(%arg0: i32) -> (i32, i32) {
    %c0_i32 = arith.constant 0 : i32
    %c0_i32_0 = arith.constant 0 : i32
    %c0_i32_1 = arith.constant 0 : i32
    return %c0_i32, %c0_i32_0 : i32, i32
  }
  func.func @transform_7(%arg0: i32) -> (i32, i32) {
    %c0_i32 = arith.constant 0 : i32
    %c0_i32_0 = arith.constant 0 : i32
    return %arg0, %c0_i32 : i32, i32
  }
}

</mosaic_0001>

<bundles_post_ra>
// kernel: _generator_forward_padded.1
= control target key start
LH: loop header
LB: loop body
LE: loop exit
PB: predicated region body
PF: predicated region fallthrough
CT: control target
= control target key end

     0   :  { %s3156_s0 = inlined_call_operand.hbm [shape: bf16[64,128], index: 0, kind: input, shape index: {}]   ;;  %s3157_s1 = inlined_call_operand.hbm [shape: bf16[128,256], index: 1, kind: input, shape index: {}]   ;;  %s3158_s2 = inlined_call_operand.hbm [shape: f32[1,256], index: 2, kind: input, shape index: {}]   ;;  %s3159_s3 = inlined_call_operand.vmem [shape: f32[1,256], index: 3, kind: input, shape index: {}]   ;;  %s3160_s4 = inlined_call_operand.vmem [shape: f32[1,256], index: 4, kind: input, shape index: {}]   ;;  %s3161_s5 = inlined_call_operand.hbm [shape: bf16[256,896], index: 5, kind: input, shape index: {}]   ;;  %s3162_s6 = inlined_call_operand.hbm [shape: f32[1,896], index: 6, kind: input, shape index: {}]   ;;  %s3163_s7 = inlined_call_operand.hbm [shape: f32[64,896], index: 7, kind: output, shape index: {}]  }
   0x1   :  { %3168 = sst [smem:[#allocation16_spill]] %s3157_s1 }
   0x2   :  { %12 = vsyncpa [#allocation3], 0 }
   0x3   :  { %14 = vsyncpa [#allocation3 + $0x1], 0 }
   0x4   :  { %15 = vsyncpa [#allocation6], 0 }
   0x5   :  { %16 = vsyncpa [#allocation9], 0 }
   0x6   :  { %17 = vsyncpa [#allocation4], 0 }
   0x7   :  { %19 = vsyncpa [#allocation4 + $0x1], 0  ;;  %s2768_s24 = smov 0   ;;  %s2770_s25 = smov 0  }
   0x8   :  { %s2772_s26 = smov 0   ;;  %s2774_s27 = smov 0  }
   0x9 LB: > { %s2789_s28 = sadd.s32 4294967295, %s2711_s27   ;;  %s1923_s29 = sadd.s32 4294967294, %s2711_s27   ;;  %s2711_s27 = sphi %s2774_s27, %s3189_s27   ;;  %s2707_s26 = sphi %s2772_s26, %s3188_s26   ;;  %s2703_s25 = sphi %s2770_s25, %s3187_s25   ;;  %s2699_s24 = sphi %s2768_s24, %s3186_s24  }
   0xa   : > { %p45_p0 = scmp.ne.s32.totalorder %s2703_s25, %s2699_s24  ;;  %p3164_p1 = scmp.eq.s32.totalorder %s2789_s28, 0 }
   0xb   : > { %p201_p3 = scmp.eq.s32.totalorder %s1923_s29, 1  ;;  %p1924_p5 = scmp.ge.s32.totalorder %s2711_s27, 1 }
   0xc   : > { %p2798_p4 = por %p3164_p1, %p45_p0  ;;  %p208_p7 = scmp.lt.s32.totalorder %s2711_s27, 3 }
   0xd   : > { %p2803_p6 = por %p201_p3, %p45_p0  ;;  %s2713_s10 = smov [#allocation5]  }
   0xe   : > { %s3169_s30 = scalar_select %p2798_p4, 1, 0 }
   0xf   : > { %s3170_s8 = scalar_select %p2803_p6, 1, 0 }
  0x10   : > { %p2808_p8 = pnand %p1924_p5, %p208_p7  ;;  %s220_s11 = sshll.u32 %s2713_s10, 4  ;;  %s221_s11 = int_to_ptr.vmem [resolvable:$true] %s220_s11 }
  0x11   : > { %s2714_s13 = smov [#allocation8]   ;;  %s2518_s15 = scalar_lea.vmem %s221_s11, 2048 }
  0x12   : > { %s3171_s9 = scalar_select %p2808_p8, 1, 0 }
  0x13   : > { %p2125_p9 = pneg %p2808_p8  ;;  %s250_s14 = sshll.u32 %s2714_s13, 4  ;;  %s251_s14 = int_to_ptr.vmem [resolvable:$true] %s250_s14 }
  0x14   : > { %p2519_p13 = scmp.ne.s32.totalorder %s221_s11, %s2518_s15  ;;  %p2526_p5 = scmp.lt.s32.totalorder %s221_s11, %s221_s11 }
  0x15   : > { %p2817_p11 = pnand %p2125_p9, %p3164_p1  ;;  %p2527_p7 = scmp.lt.s32.totalorder %s2518_s15, %s2518_s15 }
  0x17   : > { %p2509_p12 = pneg %p2817_p11  ;;  %p2528_p10 = por %p2527_p7, %p2526_p5 }
  0x19   : > { %p2521_p0 = pnand %p2519_p13, %p2509_p12 }
  0x1b   : > { %p2522_p3 = pneg %p2521_p0 }
  0x1d   : > { %p2529_p9 = pnand %p2528_p10, %p2522_p3 }
  0x1f   : > { %2532 = shalt.err (!%p2529_p9)
}
  0x20   : > { %s2715_s16 = smov 128   ;;  %s2716_s17 = smov 8  }
  0x21   : > { %s3173_s1 = sld [smem:[#allocation16_spill]]  ;;  %s2544_s20 = scalar_lea.vmem %s251_s14, 14336 }
  0x22   : > { %p2545_p1 = scmp.ne.s32.totalorder %s251_s14, %s2544_s20  ;;  %p2552_p2 = scmp.lt.s32.totalorder %s251_s14, %s251_s14 }
  0x23   : > { %p2553_p6 = scmp.lt.s32.totalorder %s2544_s20, %s2544_s20 }
  0x24   : > { %p2547_p13 = pnand %p2545_p1, %p2509_p12 }
  0x25   : > { %p2554_p5 = por %p2553_p6, %p2552_p2 }
  0x26   : > { %p2548_p0 = pneg %p2547_p13 }
  0x27   : > { %2128 = dma.hbm_to_vmem [thread:$0]  (!%p2817_p11), %s3173_s1, 2048, %s221_s11, [#allocation6], %s2715_s16, %s2715_s16, %s2716_s17  }
  0x28   : > { %p2555_p10 = pnand %p2554_p5, %p2548_p0 }
  0x2a   : > { %2558 = shalt.err (!%p2555_p10)
}
  0x2b   : > { %s2717_s21 = smov 448   ;;  %s2718_s22 = smov 28  }
  0x2c   : > { %2134 = dma.hbm_to_vmem [thread:$0]  (!%p2817_p11), %s3161_s5, 14336, %s251_s14, [#allocation9], %s2717_s21, %s2717_s21, %s2718_s22  }
  0x2d   : > { %s2719_s10 = smov [#allocation7]   ;;  %s2720_s13 = smov [#allocation10]  }
  0x2e   : > { %s234_s11 = sshll.u32 %s2719_s10, 4  ;;  %s264_s15 = sshll.u32 %s2720_s13, 4  ;;  %s235_s11 = int_to_ptr.vmem [resolvable:$true] %s234_s11  ;;  %s265_s15 = int_to_ptr.vmem [resolvable:$true] %s264_s15 }
  0x2f   : > { %s2570_s16 = scalar_lea.vmem %s235_s11, 32  ;;  %p2578_p3 = scmp.lt.s32.totalorder %s235_s11, %s235_s11 }
  0x30   : > { %p2571_p1 = scmp.ne.s32.totalorder %s235_s11, %s2570_s16  ;;  %p2579_p7 = scmp.lt.s32.totalorder %s2570_s16, %s2570_s16 }
  0x32   : > { %p2573_p2 = pnand %p2571_p1, %p2509_p12  ;;  %p2580_p9 = por %p2579_p7, %p2578_p3 }
  0x34   : > { %p2574_p6 = pneg %p2573_p2 }
  0x36   : > { %p2581_p13 = pnand %p2580_p9, %p2574_p6 }
  0x38   : > { %2584 = shalt.err (!%p2581_p13)
}
  0x39   : > { %2131 = dma.hbm_to_vmem [thread:$0]  (!%p2817_p11), %s3158_s2, 32, %s235_s11, [#allocation6]  }
  0x3a   : > { %s2596_s18 = scalar_lea.vmem %s265_s15, 112  ;;  %s2603_s19 = scalar_lea.vmem %s265_s15, 128 }
  0x3b   : > { %p2597_p0 = scmp.ne.s32.totalorder %s265_s15, %s2596_s18  ;;  %p2604_p1 = scmp.lt.s32.totalorder %s265_s15, %s265_s15 }
  0x3c   : > { %p2605_p2 = scmp.lt.s32.totalorder %s2603_s19, %s2596_s18 }
  0x3d   : > { %p2599_p5 = pnand %p2597_p0, %p2509_p12 }
  0x3e   : > { %p2606_p4 = por %p2605_p2, %p2604_p1 }
  0x3f   : > { %p2600_p10 = pneg %p2599_p5 }
  0x41   : > { %p2607_p3 = pnand %p2606_p4, %p2600_p10 }
  0x43   : > { %2610 = shalt.err (!%p2607_p3)
}
  0x44   : > { %2137 = dma.hbm_to_vmem [thread:$0]  (!%p2817_p11), %s3162_s6, 112, %s265_s15, [#allocation9]  }
  0x45   : > { %s2856_s22 = sadd.s32 1, %s2711_s27   ;;  %s32_s12 = sadd.s32 1, %s2707_s26 }
  0x46   : > { %s29_s23 = ssub.s32 %s2711_s27, %s2856_s22  ;;  %p39_p12 = scmp.ne.s32.totalorder %s2707_s26, %s2703_s25 }
  0x47   : > { %p30_p4 = scmp.eq.s32.totalorder %s29_s23, 0  ;;  %p40_p6 = scmp.eq.s32.totalorder %s2711_s27, 0 }
  0x48   : > { %p3174_p9 = scmp.eq.s32.totalorder %s2789_s28, 1  ;;  %p2150_p0 = scmp.lt.s32.totalorder %s2711_s27, 2 }
  0x49   : > { %s2865_s29 = scalar_select %p30_p4, %s2707_s26, %s32_s12  }
  0x4a   : > { %p41_p7 = por %p40_p6, %p39_p12  ;;  %p2869_p13 = por %p3174_p9, %p39_p12 }
  0x4b   : > { %s275_s11 = sand.u32 1, %s2707_s26   ;;  %s2074_s15 = sshll.u32 %s2711_s27, 8 }
  0x4c   : > { %s3175_s10 = scalar_select %p2869_p13, 1, 0 }
  0x4d   : > { %s1930_s13 = sshll.u32 %s275_s11, 4  ;;  %s2879_s17 = scalar_lea.hbm %s3156_s0, %s2074_s15 }
  0x4e   : > { %s279_s18 = scalar_lea.vmem [#allocation2], %s1930_s13  ;;  %p2883_p11 = pnand %p2150_p0, %p41_p7 }
  0x4f   : > { %s286_s19 = sshll.u32 %s279_s18, 4  ;;  %s2887_s21 = scalar_lea.sflag [#allocation3], %s275_s11  ;;  %s2881_s19 = int_to_ptr.vmem [resolvable:$true] %s286_s19 }
  0x50   : > { %s2611_s23 = scalar_lea.hbm %s2879_s17, 256  ;;  %p2613_p10 = pneg %p2883_p11 }
  0x51   : > { %p2612_p5 = scmp.ne.s32.totalorder %s2879_s17, %s2611_s23  ;;  %s2616_s13 = scalar_lea.hbm %s3156_s0, 512 }
  0x52   : > { %p2617_p3 = scmp.lt.s32.totalorder %s2879_s17, %s3156_s0  ;;  %p2618_p4 = scmp.lt.s32.totalorder %s2616_s13, %s2611_s23 }
  0x53   : > { %p2614_p1 = pnand %p2613_p10, %p2612_p5 }
  0x54   : > { %p2619_p12 = por %p2618_p4, %p2617_p3 }
  0x55   : > { %p2615_p2 = pneg %p2614_p1 }
  0x57   : > { %p2620_p6 = pnand %p2619_p12, %p2615_p2 }
  0x59   : > { %2623 = shalt.err (!%p2620_p6)
}
  0x5a   : > { %s2624_s11 = scalar_lea.vmem %s2881_s19, 256  ;;  %s2721_s18 = smov [#allocation2]  }
  0x5b   : > { %p2625_p7 = scmp.ne.s32.totalorder %s2881_s19, %s2624_s11  ;;  %s2629_s1 = sshll.u32 %s2721_s18, 4  ;;  %s2630_s1 = int_to_ptr.vmem [resolvable:$false] %s2629_s1 }
  0x5c   : > { %s2631_s12 = scalar_lea.vmem %s2630_s1, 512  ;;  %p2632_p5 = scmp.lt.s32.totalorder %s2881_s19, %s2630_s1 }
  0x5d   : > { %p2627_p9 = pnand %p2625_p7, %p2613_p10  ;;  %p2633_p1 = scmp.lt.s32.totalorder %s2631_s12, %s2624_s11 }
  0x5f   : > { %p2628_p0 = pneg %p2627_p9  ;;  %p2634_p13 = por %p2633_p1, %p2632_p5 }
  0x61   : > { %p2635_p8 = pnand %p2634_p13, %p2628_p0 }
  0x63   : > { %2638 = shalt.err (!%p2635_p8)
}
  0x64   : > { %s2722_s23 = smov 64   ;;  %s2723_s15 = smov 4  }
  0x65   : > { %2141 = dma.hbm_to_vmem [thread:$0]  (!%p2883_p11), %s2879_s17, 256, %s2881_s19, %s2887_s21, %s2722_s23, %s2722_s23, %s2723_s15  }
  0x66   : > { %p3177_p10 = scmp.ne.s32.totalorder %s3171_s9, 0 }
  0x67   : > { %s2911_s13 = sand.u32 (!%p3177_p10), 1, %s2703_s25   ;;  %p3178_p8 = scmp.ne.s32.totalorder (!%p3177_p10), %s3169_s30, 0 }
  0x68   : > { %298 = sbr.rel (%p3177_p10) target bundleno = 989 (0x3dd), region = 48  ;;  %s1934_s1 = sshll.u32 (!%p3177_p10), %s2911_s13, 4 }
  0x69   : > { %s301_s16 = scalar_lea.sflag (!%p3177_p10), [#allocation3], %s2911_s13  ;;  %s2915_s14 = scalar_lea.vmem (!%p3177_p10), [#allocation2], %s1934_s1 }
  0x6d   : > { %2682 = dma.done.wait (%p3178_p8), %s301_s16, 256  }
  0x6e   : > { %2684 = vsyncadd (%p3178_p8), %s301_s16, 4294967040  ;;  %p3179_p13 = scmp.eq.s32.totalorder %s2789_s28, 0 }
  0x70   : > { %2686 = dma.done.wait (%p3179_p13), [#allocation6], 2080   ;;  %p3180_p11 = pmov %p3179_p13 }
  0x72   : > { %2688 = vsyncadd (%p3180_p11), [#allocation6], 4294965216  ;;  %p3181_p2 = pmov %p3180_p11 }
  0x74   : > { %2690 = dma.done.wait (%p3181_p2), [#allocation9], 14448   ;;  %p3182_p3 = pmov %p3181_p2 }
  0x75   : > { %v2724_v0 = vmov 0   ;;  %v2201_v1 = vld [vmem:[#allocation5 + $0x74] ss:$8 sps:$4 sm:$0xff]   ;;  %v2203_v2 = vld [vmem:[#allocation5 + $0x70] ss:$8 sps:$4 sm:$0xff]   ;;  %v376_v19 = vlaneseq  ;;  %s2103_s20 = smul.u32 224, %s2911_s13 }
  0x76   : > { %2692 = vsyncadd (%p3182_p3), [#allocation9], 4294952848  ;;  %510 = vmatprep.mubr.bf16.mxu0 %v2724_v0  ;;  %478 = vmatprep.subr.bf16.mxu0 %v2201_v1  ;;  %v2204_v3 = vld [vmem:[#allocation5 + $0x64] ss:$8 sps:$4 sm:$0xff]   ;;  %v2206_v4 = vld [vmem:[#allocation5 + $0x60] ss:$8 sps:$4 sm:$0xff]  }
  0x77   : > { %479 = vmatpush1.bf16.msra.mxu0 %v2203_v2  ;;  %v2207_v5 = vld [vmem:[#allocation5 + $0x54] ss:$8 sps:$4 sm:$0xff]   ;;  %v2209_v6 = vld [vmem:[#allocation5 + $0x50] ss:$8 sps:$4 sm:$0xff]   ;;  %v2210_v7 = vld [vmem:[#allocation5 + $0x44] ss:$8 sps:$4 sm:$0xff]  }
  0x78   : > { %480 = vmatprep.subr.bf16.mxu0 %v2204_v3  ;;  %v2212_v8 = vld [vmem:[#allocation5 + $0x40] ss:$8 sps:$4 sm:$0xff]   ;;  %v2213_v9 = vld [vmem:[#allocation5 + $0x34] ss:$8 sps:$4 sm:$0xff]   ;;  %v2215_v10 = vld [vmem:[#allocation5 + $0x30] ss:$8 sps:$4 sm:$0xff]  }
  0x79   : > { %v2216_v11 = vld [vmem:[#allocation5 + $0x24] ss:$8 sps:$4 sm:$0xff]   ;;  %v2218_v12 = vld [vmem:[#allocation5 + $0x20] ss:$8 sps:$4 sm:$0xff]   ;;  %v2219_v13 = vld [vmem:[#allocation5 + $0x14] ss:$8 sps:$4 sm:$0xff]  }
  0x7a   : > { %v2221_v14 = vld [vmem:[#allocation5 + $0x10] ss:$8 sps:$4 sm:$0xff]   ;;  %v2222_v15 = vld [vmem:[#allocation5 + $0x4] ss:$8 sps:$4 sm:$0xff]   ;;  %v2224_v16 = vld [vmem:[#allocation5] ss:$8 sps:$4 sm:$0xff]  }
  0x7b   : > { %481 = vmatpush1.bf16.msra.mxu0 %v2206_v4  ;;  %v2225_v17 = vld [vmem:[%s2915_s14] sm:$0xff]   ;;  %v2226_v18 = vld [vmem:[%s2915_s14 + $0x8] sm:$0xff]   ;;  %v2932_v20 = vshrl.u32 %v376_v19, 7  ;;  %s3072_s21 = scalar_lea.vmem [#allocation11], %s2103_s20  ;;  %s2104_s11 = smul.u32 3584, %s2789_s28 }
  0x7c   : > { %482 = vmatprep.subr.bf16.mxu0 %v2207_v5  ;;  %v374_v22 = vld [vmem:[#allocation7] sm:$0x3]  ;;  %v2227_v62 = vld [vmem:[#allocation8 + $0x18c] ss:$28 sps:$4 sm:$0xff]   ;;  %v2233_v2 = vld [vmem:[#allocation8 + $0x154] ss:$28 sps:$4 sm:$0xff]  }
  0x7d   : > { %v2935_v21 = vsub.s32 0, %v2932_v20  ;;  %v2938_v23 = vsub.s32 1, %v2932_v20  ;;  %v2229_v63 = vld [vmem:[#allocation8 + $0x190] ss:$28 sps:$4 sm:$0xff]   ;;  %v2232_v1 = vld [vmem:[#allocation8 + $0x188] ss:$28 sps:$4 sm:$0xff]   ;;  %1421 = vmatprep.subr.bf16.mxu1 %v2227_v62  ;;  %s3109_s15 = scalar_lea.hbm %s3163_s7, %s2104_s11 }
  0x7e   : > { %v2237_v3 = vld [vmem:[#allocation8 + $0x15c] ss:$28 sps:$4 sm:$0xff]   ;;  %1422 = vmatpush1.bf16.msra.mxu1 %v2232_v1  ;;  %v2238_v5 = vld [vmem:[#allocation8 + $0x150] ss:$28 sps:$4 sm:$0xff]   ;;  %s1812_s18 = sshll.u32 %s3072_s21, 4  ;;  %s1798_s1 = scalar_lea.sflag [#allocation4], %s2911_s13  ;;  %s3112_s18 = int_to_ptr.vmem [resolvable:$true] %s1812_s18 }
  0x7f   : > { %483 = vmatpush1.bf16.msra.mxu0 %v2209_v6  ;;  %v379_v24 = vrot.slane %v374_v22, %v2935_v21  ;;  %v383_v25 = vrot.slane %v374_v22, %v2938_v23  ;;  %v2235_v4 = vld [vmem:[#allocation8 + $0x158] ss:$28 sps:$4 sm:$0xff]   ;;  %1423 = vmatprep.subr.bf16.mxu1 %v2233_v2  ;;  %s2639_s28 = scalar_lea.vmem %s3112_s18, 3584  ;;  %p3183_p12 = scmp.ne.s32.totalorder %s3175_s10, 0 }
  0x80   : > { %484 = vmatprep.subr.bf16.mxu0 %v2210_v7  ;;  %v2239_v6 = vld [vmem:[#allocation8 + $0x11c] ss:$28 sps:$4 sm:$0xff]   ;;  %v2243_v7 = vld [vmem:[#allocation8 + $0x124] ss:$28 sps:$4 sm:$0xff]   ;;  %p2640_p4 = scmp.ne.s32.totalorder %s3112_s18, %s2639_s28  ;;  %s2725_s16 = smov [#allocation11]  }
  0x81   : > { %v2261_v22 = vld [vmem:[#allocation8 + $0x7c] ss:$28 sps:$4 sm:$0xff]   ;;  %s2643_s14 = sshll.u32 %s2725_s16, 4  ;;  %s2644_s14 = int_to_ptr.vmem [resolvable:$false] %s2643_s14 }
  0x82   : > { %1424 = vmatpush1.bf16.msra.mxu1 %v2238_v5  ;;  %p2641_p6 = pnand %p2640_p4, %p3183_p12  ;;  %s2645_s30 = scalar_lea.vmem %s2644_s14, 7168 }
  0x83   : > { %485 = vmatpush1.bf16.msra.mxu0 %v2212_v8  ;;  %v2241_v8 = vld [vmem:[#allocation8 + $0x120] ss:$28 sps:$4 sm:$0xff]   ;;  %1425 = vmatprep.subr.bf16.mxu1 %v2239_v6  ;;  %p2646_p9 = scmp.lt.s32.totalorder %s3112_s18, %s2644_s14  ;;  %p2647_p0 = scmp.lt.s32.totalorder %s2645_s30, %s2639_s28 }
  0x84   : > { %486 = vmatprep.subr.bf16.mxu0 %v2213_v9  ;;  %v2244_v9 = vld [vmem:[#allocation8 + $0x118] ss:$28 sps:$4 sm:$0xff]   ;;  %p2642_p7 = pneg %p2641_p6 }
  0x85   : > { %p2648_p5 = por %p2647_p0, %p2646_p9 }
  0x86   : > { %1426 = vmatpush1.bf16.msra.mxu1 %v2244_v9  ;;  %v2281_v9 = vld [vmem:[#allocation8 + $0x314] ss:$28 sps:$4 sm:$0xff]  }
  0x87   : > { %487 = vmatpush1.bf16.msra.mxu0 %v2215_v10  ;;  %v2245_v10 = vld [vmem:[#allocation8 + $0xe4] ss:$28 sps:$4 sm:$0xff]   ;;  %p2649_p1 = pnand %p2648_p5, %p2642_p7 }
  0x88   : > { %488 = vmatprep.subr.bf16.mxu0 %v2216_v11  ;;  %v2249_v11 = vld [vmem:[#allocation8 + $0xec] ss:$28 sps:$4 sm:$0xff]   ;;  %1427 = vmatprep.subr.bf16.mxu1 %v2245_v10  ;;  %v2285_v10 = vld [vmem:[#allocation8 + $0x31c] ss:$28 sps:$4 sm:$0xff]  }
  0x8b   : > { %489 = vmatpush1.bf16.msra.mxu0 %v2218_v12  ;;  %v2247_v12 = vld [vmem:[#allocation8 + $0xe8] ss:$28 sps:$4 sm:$0xff]  }
  0x8c   : > { %490 = vmatprep.subr.bf16.mxu0 %v2219_v13  ;;  %v2250_v13 = vld [vmem:[#allocation8 + $0xe0] ss:$28 sps:$4 sm:$0xff]  }
  0x8d   : > { %1428 = vmatpush1.bf16.msra.mxu1 %v2250_v13  ;;  %v2289_v13 = vld [vmem:[#allocation8 + $0x2e0] ss:$28 sps:$4 sm:$0xff]  }
  0x8f   : > { %491 = vmatpush1.bf16.msra.mxu0 %v2221_v14  ;;  %v2251_v14 = vld [vmem:[#allocation8 + $0xac] ss:$28 sps:$4 sm:$0xff]  }
  0x90   : > { %492 = vmatprep.subr.bf16.mxu0 %v2222_v15  ;;  %v2255_v15 = vld [vmem:[#allocation8 + $0xb4] ss:$28 sps:$4 sm:$0xff]   ;;  %1429 = vmatprep.subr.bf16.mxu1 %v2251_v14 }
  0x91   : > { %v2292_v14 = vld [vmem:[#allocation8 + $0x2d8] ss:$28 sps:$4 sm:$0xff]  }
  0x93   : > { %493 = vmatpush1.bf16.msra.mxu0 %v2224_v16  ;;  %v2253_v16 = vld [vmem:[#allocation8 + $0xb0] ss:$28 sps:$4 sm:$0xff]  }
  0x96   : > { %511 = vmatmul.mubr.bf16.vlgmr.msra.gmra.mxu0 %v2225_v17  ;;  %v2256_v17 = vld [vmem:[#allocation8 + $0xa8] ss:$28 sps:$4 sm:$0xff]  }
  0x97   : > { %520 = vmatprep.mubr.bf16.mxu0 %v2724_v0  ;;  %v2231_v0 = vld [vmem:[#allocation8 + $0x194] ss:$28 sps:$4 sm:$0xff]   ;;  %1430 = vmatpush1.bf16.msra.mxu1 %v2256_v17  ;;  %v2295_v17 = vld [vmem:[#allocation8 + $0x2a8] ss:$28 sps:$4 sm:$0xff]  }
  0x98   : > { %1474 = vmatprep.subr.bf16.mxu0 %v2231_v0 }
  0x99   : > { %1475 = vmatpush1.bf16.msra.mxu0 %v2229_v63 }
  0x9a   : > { %1476 = vmatprep.subr.bf16.mxu0 %v2237_v3 }
  0x9d   : > { %1477 = vmatpush1.bf16.msra.mxu0 %v2235_v4 }
  0x9e   : > { %521 = vmatmul.mubr.bf16.gmra.mxu0 %v2226_v18  ;;  %1478 = vmatprep.subr.bf16.mxu0 %v2243_v7  ;;  %v2257_v18 = vld [vmem:[#allocation8 + $0x74] ss:$28 sps:$4 sm:$0xff]  }
  0x9f   : > { %1431 = vmatprep.subr.bf16.mxu1 %v2257_v18  ;;  %v2298_v18 = vld [vmem:[#allocation8 + $0x2a0] ss:$28 sps:$4 sm:$0xff]  }
  0xa1   : > { %1479 = vmatpush1.bf16.msra.mxu0 %v2241_v8 }
  0xa2   : > { %1480 = vmatprep.subr.bf16.mxu0 %v2249_v11  ;;  %v2283_v11 = vld [vmem:[#allocation8 + $0x318] ss:$28 sps:$4 sm:$0xff]  }
  0xa5   : > { %1481 = vmatpush1.bf16.msra.mxu0 %v2247_v12  ;;  %v2286_v12 = vld [vmem:[#allocation8 + $0x310] ss:$28 sps:$4 sm:$0xff]  }
  0xa6   : > { %1482 = vmatprep.subr.bf16.mxu0 %v2255_v15  ;;  %v2293_v15 = vld [vmem:[#allocation8 + $0x2a4] ss:$28 sps:$4 sm:$0xff]  }
  0xa9   : > { %1483 = vmatpush1.bf16.msra.mxu0 %v2253_v16  ;;  %v2297_v16 = vld [vmem:[#allocation8 + $0x2ac] ss:$28 sps:$4 sm:$0xff]  }
  0xaa   : > { %1484 = vmatprep.subr.bf16.mxu0 %v2261_v22  ;;  %v2299_v22 = vld [vmem:[#allocation8 + $0x26c] ss:$28 sps:$4 sm:$0xff]  }
 0x156   : > { %v512_v26 = vpop.f32.mrf.mxu0 }
 0x157   : > { %v513_v27 = vadd.f32 %v512_v26, %v379_v24  ;;  %v2263_v26 = vld [vmem:[#allocation8 + $0x3c] ss:$28 sps:$4 sm:$0xff]  }
 0x158   : > { %v514_v28 = vpop.f32.mrf.mxu0 }
 0x159   : > { %v539_v29 = vmul.f32 0.02, %v513_v27  ;;  %v515_v30 = vadd.f32 %v514_v28, %v383_v25  ;;  %vm531_vm0 = vcmp.gt.f32.partialorder %v513_v27, 0.0  ;;  %v2265_v28 = vld [vmem:[#allocation8 + $0x40] ss:$28 sps:$4 sm:$0xff]  }
 0x15a   : > { %v516_v31 = vpop.f32.mrf.mxu0 }
 0x15b   : > { %v540_v32 = vmul.f32 0.02, %v515_v30  ;;  %v517_v33 = vadd.f32 %v516_v31, %v379_v24  ;;  %vm532_vm1 = vcmp.gt.f32.partialorder %v515_v30, 0.0  ;;  %v2942_v35 = vsel %vm531_vm0, %v513_v27, %v539_v29  ;;  %v2267_v27 = vld [vmem:[#allocation8 + $0x44] ss:$28 sps:$4 sm:$0xff]  }
 0x15c   : > { %v518_v34 = vpop.f32.mrf.mxu0  ;;  %v2268_v29 = vld [vmem:[#allocation8 + $0x38] ss:$28 sps:$4 sm:$0xff]   ;;  %v2273_v31 = vld [vmem:[#allocation8 + $0xc] ss:$28 sps:$4 sm:$0xff]  }
 0x15d   : > { %v541_v36 = vmul.f32 0.02, %v517_v33  ;;  %v519_v37 = vadd.f32 %v518_v34, %v383_v25  ;;  %v2944_v38 = vsel %vm532_vm1, %v515_v30, %v540_v32  ;;  %vm533_vm2 = vcmp.gt.f32.partialorder %v517_v33, 0.0  ;;  %v2269_v30 = vld [vmem:[#allocation8 + $0x4] ss:$28 sps:$4 sm:$0xff]  }
 0x15e   : > { %v522_v39 = vpop.f32.mrf.mxu0  ;;  %v555_v40 = vadd.f32 %v2944_v38, %v2942_v35  ;;  %v2271_v32 = vld [vmem:[#allocation8 + $0x8] ss:$28 sps:$4 sm:$0xff]  }
 0x15f   : > { %v542_v41 = vmul.f32 0.02, %v519_v37  ;;  %v523_v42 = vadd.f32 %v522_v39, %v379_v24  ;;  %vm534_vm3 = vcmp.gt.f32.partialorder %v519_v37, 0.0  ;;  %v2948_v44 = vsel %vm533_vm2, %v517_v33, %v541_v36  ;;  %v2274_v33 = vld [vmem:[#allocation8] ss:$28 sps:$4 sm:$0xff]  }
 0x160   : > { %v524_v43 = vpop.f32.mrf.mxu0  ;;  %556 = vadd.xlane.f32.xlu0 %v555_v40  ;;  %v2275_v34 = vld [vmem:[#allocation8 + $0x34c] ss:$28 sps:$4 sm:$0xff]   ;;  %v2279_v36 = vld [vmem:[#allocation8 + $0x354] ss:$28 sps:$4 sm:$0xff]   ;;  %v572_v40 = vand.u32 127, %v376_v19 }
 0x161   : > { %v543_v45 = vmul.f32 0.02, %v523_v42  ;;  %v525_v46 = vadd.f32 %v524_v43, %v383_v25  ;;  %v2950_v47 = vsel %vm534_vm3, %v519_v37, %v542_v41  ;;  %vm535_vm4 = vcmp.gt.f32.partialorder %v523_v42, 0.0  ;;  %v2277_v37 = vld [vmem:[#allocation8 + $0x350] ss:$28 sps:$4 sm:$0xff]  }
 0x162   : > { %v526_v48 = vpop.f32.mrf.mxu0  ;;  %v558_v49 = vadd.f32 %v2950_v47, %v2948_v44  ;;  %v2280_v39 = vld [vmem:[#allocation8 + $0x348] ss:$28 sps:$4 sm:$0xff]   ;;  %v573_v41 = vadd.s32 128, %v572_v40 }
 0x163   : > { %v544_v50 = vmul.f32 0.02, %v525_v46  ;;  %v527_v51 = vadd.f32 %v526_v48, %v379_v24  ;;  %vm536_vm5 = vcmp.gt.f32.partialorder %v525_v46, 0.0  ;;  %v2954_v52 = vsel %vm535_vm4, %v523_v42, %v543_v45  ;;  %v2259_v24 = vld [vmem:[#allocation8 + $0x78] ss:$28 sps:$4 sm:$0xff]  }
 0x164   : > { %v528_v53 = vpop.f32.mrf.mxu0  ;;  %559 = vadd.xlane.f32.xlu0 %v558_v49  ;;  %1485 = vmatpush1.bf16.msra.mxu0 %v2259_v24  ;;  %vm575_vm8 = vcmp.lt.s32.totalorder %v573_v41, 200  ;;  %v2303_v24 = vld [vmem:[#allocation8 + $0x274] ss:$28 sps:$4 sm:$0xff]   ;;  %v2319_v40 = vld [vmem:[#allocation8 + $0x1c8] ss:$28 sps:$4 sm:$0xff]  }
 0x165   : > { %v545_v54 = vmul.f32 0.02, %v527_v51  ;;  %v529_v55 = vadd.f32 %v528_v53, %v383_v25  ;;  %v2956_v56 = vsel %vm536_vm5, %v525_v46, %v544_v50  ;;  %vm537_vm6 = vcmp.gt.f32.partialorder %v527_v51, 0.0  ;;  %v2262_v25 = vld [vmem:[#allocation8 + $0x70] ss:$28 sps:$4 sm:$0xff]   ;;  %1486 = vmatprep.subr.bf16.mxu0 %v2267_v27 }
 0x166   : > { %v561_v57 = vadd.f32 %v2956_v56, %v2954_v52  ;;  %1432 = vmatpush1.bf16.msra.mxu1 %v2262_v25  ;;  %v2301_v25 = vld [vmem:[#allocation8 + $0x270] ss:$28 sps:$4 sm:$0xff]   ;;  %v2325_v41 = vld [vmem:[#allocation8 + $0x19c] ss:$28 sps:$4 sm:$0xff]  }
 0x167   : > { %v546_v58 = vmul.f32 0.02, %v529_v55  ;;  %vm538_vm7 = vcmp.gt.f32.partialorder %v529_v55, 0.0  ;;  %v2960_v59 = vsel %vm537_vm6, %v527_v51, %v545_v54  ;;  %1433 = vmatprep.subr.bf16.mxu1 %v2263_v26  ;;  %v2304_v26 = vld [vmem:[#allocation8 + $0x268] ss:$28 sps:$4 sm:$0xff]  }
 0x168   : > { %562 = vadd.xlane.f32.xlu1 %v561_v57  ;;  %1487 = vmatpush1.bf16.msra.mxu0 %v2265_v28  ;;  %v2305_v27 = vld [vmem:[#allocation8 + $0x234] ss:$28 sps:$4 sm:$0xff]  }
 0x169   : > { %v2962_v60 = vsel %vm538_vm7, %v529_v55, %v546_v58  ;;  %1488 = vmatprep.subr.bf16.mxu0 %v2273_v31  ;;  %v2307_v28 = vld [vmem:[#allocation8 + $0x238] ss:$28 sps:$4 sm:$0xff]  }
 0x16a   : > { %v564_v61 = vadd.f32 %v2962_v60, %v2960_v59  ;;  %1434 = vmatpush1.bf16.msra.mxu1 %v2268_v29  ;;  %v2309_v29 = vld [vmem:[#allocation8 + $0x23c] ss:$28 sps:$4 sm:$0xff]  }
 0x16b   : > { %1435 = vmatprep.subr.bf16.mxu1 %v2269_v30  ;;  %v2310_v30 = vld [vmem:[#allocation8 + $0x230] ss:$28 sps:$4 sm:$0xff]   ;;  %v2311_v31 = vld [vmem:[#allocation8 + $0x1fc] ss:$28 sps:$4 sm:$0xff]  }
 0x16c   : > { %565 = vadd.xlane.f32.xlu1 %v564_v61  ;;  %1489 = vmatpush1.bf16.msra.mxu0 %v2271_v32  ;;  %v2315_v32 = vld [vmem:[#allocation8 + $0x204] ss:$28 sps:$4 sm:$0xff]  }
 0x16d   : > { %1490 = vmatprep.subr.bf16.mxu0 %v2279_v36  ;;  %v2317_v36 = vld [vmem:[#allocation8 + $0x1c4] ss:$28 sps:$4 sm:$0xff]  }
 0x16e   : > { %1436 = vmatpush1.bf16.msra.mxu1 %v2274_v33  ;;  %v2316_v33 = vld [vmem:[#allocation8 + $0x1f8] ss:$28 sps:$4 sm:$0xff]  }
 0x16f   : > { %1437 = vmatprep.subr.bf16.mxu1 %v2275_v34  ;;  %v2313_v34 = vld [vmem:[#allocation8 + $0x200] ss:$28 sps:$4 sm:$0xff]  }
 0x170   : > { %1491 = vmatpush2.bf16.msra.mxu0 %v2277_v37  ;;  %v2321_v37 = vld [vmem:[#allocation8 + $0x1cc] ss:$28 sps:$4 sm:$0xff]  }
 0x171   : > { %1492 = vmatprep.subr.bf16.mxu0 %v2285_v10 }
 0x172   : > { %1438 = vmatpush2.bf16.msra.mxu1 %v2280_v39  ;;  %v2322_v39 = vld [vmem:[#allocation8 + $0x1c0] ss:$28 sps:$4 sm:$0xff]  }
 0x173   : > { %1439 = vmatprep.subr.bf16.mxu1 %v2281_v9 }
 0x174   : > { %1493 = vmatpush2.bf16.msra.mxu0 %v2283_v11 }
 0x176   : > { %1440 = vmatpush2.bf16.msra.mxu1 %v2286_v12 }
 0x1e9   : > { %v557_v42 = vpop.xlane.xlu0 %556 }
 0x1ea   : > { %v567_v43 = vmul.f32 0.005, %v557_v42  ;;  %v2326_v42 = vld [vmem:[#allocation8 + $0x360] ss:$28 sps:$4 sm:$0xff]  }
 0x1ec   : > { %v2968_v45 = vsub.f32 %v2942_v35, %v567_v43  ;;  %v577_v46 = vsub.f32 %v2944_v38, %v567_v43 }
 0x1ed   : > { %v560_v48 = vpop.xlane.xlu0 %559 }
 0x1ee   : > { %v568_v49 = vmul.f32 0.005, %v560_v48  ;;  %v2972_v50 = vsel %vm575_vm8, %v577_v46, 0.0  ;;  %v596_v51 = vmul.f32 %v2968_v45, %v2968_v45 }
 0x1ef   : > { %v597_v19 = vmul.f32 %v2972_v50, %v2972_v50 }
 0x1f0   : > { %v2979_v53 = vsub.f32 %v2948_v44, %v568_v49  ;;  %v579_v54 = vsub.f32 %v2950_v47, %v568_v49 }
 0x1f1   : > { %v563_v35 = vpop.xlane.xlu1 %562  ;;  %v604_v55 = vadd.f32 %v597_v19, %v596_v51 }
 0x1f2   : > { %v569_v57 = vmul.f32 0.005, %v563_v35  ;;  %v2983_v38 = vsel %vm575_vm8, %v579_v54, 0.0  ;;  %v598_v58 = vmul.f32 %v2979_v53, %v2979_v53 }
 0x1f3   : > { %605 = vadd.xlane.f32.xlu0 %v604_v55  ;;  %v599_v61 = vmul.f32 %v2983_v38, %v2983_v38 }
 0x1f4   : > { %v2990_v62 = vsub.f32 %v2954_v52, %v569_v57  ;;  %v581_v44 = vsub.f32 %v2956_v56, %v569_v57 }
 0x1f5   : > { %v566_v63 = vpop.xlane.xlu1 %565  ;;  %v607_v47 = vadd.f32 %v599_v61, %v598_v58 }
 0x1f6   : > { %v570_v0 = vmul.f32 0.005, %v566_v63  ;;  %v2994_v1 = vsel %vm575_vm8, %v581_v44, 0.0  ;;  %v600_v2 = vmul.f32 %v2990_v62, %v2990_v62  ;;  %v636_v44 = vld [vmem:[%s3159_s3] sm:$0x3] }
 0x1f7   : > { %608 = vadd.xlane.f32.xlu1 %v607_v47  ;;  %v601_v3 = vmul.f32 %v2994_v1, %v2994_v1  ;;  %v645_v47 = vrot.slane %v636_v44, %v2938_v23 }
 0x1f8   : > { %v3001_v4 = vsub.f32 %v2960_v59, %v570_v0  ;;  %v583_v52 = vsub.f32 %v2962_v60, %v570_v0  ;;  %v2287_v59 = vld [vmem:[#allocation8 + $0x2dc] ss:$28 sps:$4 sm:$0xff]   ;;  %v2291_v60 = vld [vmem:[#allocation8 + $0x2e4] ss:$28 sps:$4 sm:$0xff]   ;;  %v641_v0 = vrot.slane %v636_v44, %v2935_v21  ;;  %v2356_v44 = vld [vmem:[#allocation8 + $0x210] ss:$28 sps:$4 sm:$0xff]  }
 0x1f9   : > { %v610_v5 = vadd.f32 %v601_v3, %v600_v2  ;;  %1441 = vmatprep.subr.bf16.mxu1 %v2287_v59  ;;  %1494 = vmatprep.subr.bf16.mxu0 %v2291_v60  ;;  %v656_v3 = vld [vmem:[%s3160_s4] sm:$0x3] }
 0x1fa   : > { %v3005_v56 = vsel %vm575_vm8, %v583_v52, 0.0  ;;  %v602_v6 = vmul.f32 %v3001_v4, %v3001_v4  ;;  %1442 = vmatpush2.bf16.msra.mxu1 %v2292_v14  ;;  %1495 = vmatpush2.bf16.msra.mxu0 %v2289_v13  ;;  %v661_v9 = vrot.slane %v656_v3, %v2935_v21 }
 0x1fb   : > { %611 = vadd.xlane.f32.xlu0 %v610_v5  ;;  %v603_v7 = vmul.f32 %v3005_v56, %v3005_v56  ;;  %1443 = vmatprep.subr.bf16.mxu1 %v2293_v15 }
 0x1fc   : > { %1496 = vmatprep.subr.bf16.mxu0 %v2297_v16 }
 0x1fd   : > { %v613_v8 = vadd.f32 %v603_v7, %v602_v6  ;;  %v665_v7 = vrot.slane %v656_v3, %v2938_v23  ;;  %v2358_v3 = vld [vmem:[#allocation8 + $0x10] ss:$28 sps:$4 sm:$0xff]  }
 0x1fe   : > { %1444 = vmatpush2.bf16.msra.mxu1 %v2298_v18  ;;  %1497 = vmatpush2.bf16.msra.mxu0 %v2295_v17  ;;  %v2323_v18 = vld [vmem:[#allocation8 + $0x198] ss:$28 sps:$4 sm:$0xff]  }
 0x1ff   : > { %614 = vadd.xlane.f32.xlu1 %v613_v8  ;;  %1445 = vmatprep.subr.bf16.mxu1 %v2299_v22 }
 0x200   : > { %1498 = vmatprep.subr.bf16.mxu0 %v2303_v24  ;;  %v2327_v24 = vld [vmem:[#allocation8 + $0x1a0] ss:$28 sps:$4 sm:$0xff]  }
 0x202   : > { %1446 = vmatpush2.bf16.msra.mxu1 %v2304_v26  ;;  %1499 = vmatpush2.bf16.msra.mxu0 %v2301_v25  ;;  %v2331_v26 = vld [vmem:[#allocation8 + $0x328] ss:$28 sps:$4 sm:$0xff]  }
 0x203   : > { %1447 = vmatprep.subr.bf16.mxu1 %v2305_v27  ;;  %1500 = vmatprep.subr.bf16.mxu0 %v2309_v29 }
 0x206   : > { %1448 = vmatpush2.bf16.msra.mxu1 %v2310_v30  ;;  %1501 = vmatpush2.bf16.msra.mxu0 %v2307_v28 }
 0x207   : > { %1449 = vmatprep.subr.bf16.mxu1 %v2311_v31  ;;  %1502 = vmatprep.subr.bf16.mxu0 %v2315_v32  ;;  %v2335_v32 = vld [vmem:[#allocation8 + $0x12c] ss:$28 sps:$4 sm:$0xff]  }
 0x20a   : > { %1450 = vmatpush2.bf16.msra.mxu1 %v2316_v33  ;;  %1503 = vmatpush2.bf16.msra.mxu0 %v2313_v34  ;;  %v2336_v33 = vld [vmem:[#allocation8 + $0x2f0] ss:$28 sps:$4 sm:$0xff]  }
 0x20b   : > { %1451 = vmatprep.subr.bf16.mxu1 %v2317_v36  ;;  %1504 = vmatprep.subr.bf16.mxu0 %v2321_v37 }
 0x20e   : > { %1452 = vmatpush2.bf16.msra.mxu1 %v2322_v39  ;;  %1505 = vmatpush2.bf16.msra.mxu0 %v2319_v40  ;;  %v2333_v39 = vld [vmem:[#allocation8 + $0x128] ss:$28 sps:$4 sm:$0xff]  }
 0x20f   : > { %1527 = vmatprep.subr.bf16.mxu1 %v2325_v41  ;;  %2075 = vmatprep.subr.bf16.mxu0 %v2326_v42  ;;  %v2337_v41 = vld [vmem:[#allocation8 + $0x130] ss:$28 sps:$4 sm:$0xff]  }
 0x210   : > { %v2340_v42 = vld [vmem:[#allocation8 + $0xf4] ss:$28 sps:$4 sm:$0xff]  }
 0x27c   : > { %v606_v43 = vpop.xlane.xlu0 %605 }
 0x27d   : > { %v616_v46 = vmul.f32 0.005, %v606_v43  ;;  %v2341_v43 = vld [vmem:[#allocation8 + $0x2b8] ss:$28 sps:$4 sm:$0xff]  }
 0x27f   : > { %v620_v48 = vadd.f32 1e-05, %v616_v46  ;;  %v2338_v46 = vld [vmem:[#allocation8 + $0xf0] ss:$28 sps:$4 sm:$0xff]  }
 0x280   : > { %v609_v49 = vpop.xlane.xlu1 %608 }
 0x281   : > { %2387 = vrsqrt.f32 %v620_v48  ;;  %v617_v51 = vmul.f32 0.005, %v609_v49  ;;  %v2342_v48 = vld [vmem:[#allocation8 + $0xf8] ss:$28 sps:$4 sm:$0xff]  }
 0x282   : > { %v2345_v49 = vld [vmem:[#allocation8 + $0xbc] ss:$28 sps:$4 sm:$0xff]  }
 0x283   : > { %v621_v19 = vadd.f32 1e-05, %v617_v51  ;;  %v2346_v51 = vld [vmem:[#allocation8 + $0x280] ss:$28 sps:$4 sm:$0xff]  }
 0x284   : > { %v612_v54 = vpop.xlane.xlu0 %611 }
 0x285   : > { %2389 = vrsqrt.f32 %v621_v19  ;;  %v618_v35 = vmul.f32 0.005, %v612_v54  ;;  %v2343_v19 = vld [vmem:[#allocation8 + $0xb8] ss:$28 sps:$4 sm:$0xff]   ;;  %v2347_v54 = vld [vmem:[#allocation8 + $0xc0] ss:$28 sps:$4 sm:$0xff]  }
 0x287   : > { %v622_v55 = vadd.f32 1e-05, %v618_v35  ;;  %v2350_v35 = vld [vmem:[#allocation8 + $0x84] ss:$28 sps:$4 sm:$0xff]  }
 0x288   : > { %v615_v57 = vpop.xlane.xlu1 %614 }
 0x289   : > { %2391 = vrsqrt.f32 %v622_v55  ;;  %v619_v58 = vmul.f32 0.005, %v615_v57  ;;  %v2351_v55 = vld [vmem:[#allocation8 + $0x248] ss:$28 sps:$4 sm:$0xff]   ;;  %v2348_v57 = vld [vmem:[#allocation8 + $0x80] ss:$28 sps:$4 sm:$0xff]  }
 0x28b   : > { %v623_v61 = vadd.f32 1e-05, %v619_v58  ;;  %v2352_v58 = vld [vmem:[#allocation8 + $0x88] ss:$28 sps:$4 sm:$0xff]  }
 0x28d   : > { %2393 = vrsqrt.f32 %v623_v61  ;;  %v2355_v61 = vld [vmem:[#allocation8 + $0x4c] ss:$28 sps:$4 sm:$0xff]  }
 0x28e   : > { %v2388_v63 = vpop.eup %2387 }
 0x28f   : > { %v629_v2 = vmul.f32 %v2388_v63, %v2972_v50  ;;  %v628_v52 = vmul.f32 %v2388_v63, %v2968_v45  ;;  %v2353_v63 = vld [vmem:[#allocation8 + $0x48] ss:$28 sps:$4 sm:$0xff]  }
 0x291   : > { %v649_v6 = vmul.f32 %v645_v47, %v629_v2  ;;  %v648_v8 = vmul.f32 %v641_v0, %v628_v52  ;;  %v2361_v2 = vld [vmem:[#allocation8 + $0x1d8] ss:$28 sps:$4 sm:$0xff]  }
 0x292   : > { %v2390_v5 = vpop.eup %2389  ;;  %v2362_v52 = vld [vmem:[#allocation8 + $0x18] ss:$28 sps:$4 sm:$0xff]  }
 0x293   : > { %v631_v10 = vmul.f32 %v2390_v5, %v2983_v38  ;;  %v630_v11 = vmul.f32 %v2390_v5, %v2979_v53  ;;  %v669_v60 = vadd.f32 %v665_v7, %v649_v6  ;;  %v668_v13 = vadd.f32 %v661_v9, %v648_v8  ;;  %v2330_v38 = vld [vmem:[#allocation8 + $0x164] ss:$28 sps:$4 sm:$0xff]   ;;  %v2365_v5 = vld [vmem:[#allocation8 + $0x35c] ss:$28 sps:$4 sm:$0xff]  }
 0x294   : > { %v2363_v6 = vld [vmem:[#allocation8 + $0x358] ss:$28 sps:$4 sm:$0xff]   ;;  %v2366_v8 = vld [vmem:[#allocation8 + $0x320] ss:$28 sps:$4 sm:$0xff]  }
 0x295   : > { %v651_v12 = vmul.f32 %v645_v47, %v631_v10  ;;  %v650_v59 = vmul.f32 %v641_v0, %v630_v11  ;;  %v2369_v10 = vld [vmem:[#allocation8 + $0x2e8] ss:$28 sps:$4 sm:$0xff]   ;;  %v2374_v11 = vld [vmem:[#allocation8 + $0x2b4] ss:$28 sps:$4 sm:$0xff]  }
 0x296   : > { %v2392_v50 = vpop.eup %2391 }
 0x297   : > { %v671_v14 = vadd.f32 %v665_v7, %v651_v12  ;;  %v670_v15 = vadd.f32 %v661_v9, %v650_v59  ;;  %v633_v45 = vmul.f32 %v2392_v50, %v2994_v1  ;;  %v632_v16 = vmul.f32 %v2392_v50, %v2990_v62  ;;  %v2328_v62 = vld [vmem:[#allocation8 + $0x160] ss:$28 sps:$4 sm:$0xff]   ;;  %v2332_v1 = vld [vmem:[#allocation8 + $0x168] ss:$28 sps:$4 sm:$0xff]   ;;  %v2372_v12 = vld [vmem:[#allocation8 + $0x2b0] ss:$28 sps:$4 sm:$0xff]  }
 0x298   : > { %v2377_v59 = vld [vmem:[#allocation8 + $0x27c] ss:$28 sps:$4 sm:$0xff]  }
 0x299   : > { %v677_v17 = vpack.c.bf16 %v671_v14, %v669_v60  ;;  %v3027_v22 = vpack.c.bf16 %v670_v15, %v668_v13  ;;  %v653_v53 = vmul.f32 %v645_v47, %v633_v45  ;;  %v652_v29 = vmul.f32 %v641_v0, %v632_v16  ;;  %v2375_v50 = vld [vmem:[#allocation8 + $0x278] ss:$28 sps:$4 sm:$0xff]   ;;  %v2380_v60 = vld [vmem:[#allocation8 + $0x244] ss:$28 sps:$4 sm:$0xff]   ;;  %v2383_v14 = vld [vmem:[#allocation8 + $0x20c] ss:$28 sps:$4 sm:$0xff]  }
 0x29a   : > { %v2394_v25 = vpop.eup %2393  ;;  %v2378_v13 = vld [vmem:[#allocation8 + $0x240] ss:$28 sps:$4 sm:$0xff]   ;;  %v2381_v15 = vld [vmem:[#allocation8 + $0x208] ss:$28 sps:$4 sm:$0xff]   ;;  %v2386_v45 = vld [vmem:[#allocation8 + $0x1d4] ss:$28 sps:$4 sm:$0xff]  }
 0x29b   : > { %1453 = vmatprep.mubr.bf16.mxu1 %v677_v17  ;;  %1506 = vmatprep.mubr.bf16.mxu0 %v677_v17  ;;  %v635_v27 = vmul.f32 %v2394_v25, %v3005_v56  ;;  %v634_v28 = vmul.f32 %v2394_v25, %v3001_v4  ;;  %v673_v34 = vadd.f32 %v665_v7, %v653_v53  ;;  %v2384_v16 = vld [vmem:[#allocation8 + $0x1d0] ss:$28 sps:$4 sm:$0xff]  }
 0x29c   : > { %1454 = vmatmul.mubr.bf16.vlgmr.msra.gmra.mxu1 %v3027_v22  ;;  %1507 = vmatmul.mubr.bf16.vlgmr.msra.gmra.mxu0 %v3027_v22  ;;  %v672_v56 = vadd.f32 %v661_v9, %v652_v29 }
 0x29d   : > { %1528 = vmatpush1.bf16.msra.mxu1 %v2323_v18  ;;  %2076 = vmatpush3.bf16.msra.mxu0 %v2327_v24  ;;  %v655_v30 = vmul.f32 %v645_v47, %v635_v27  ;;  %v654_v31 = vmul.f32 %v641_v0, %v634_v28  ;;  %v2357_v47 = vld [vmem:[#allocation8 + $0x50] ss:$28 sps:$4 sm:$0xff]   ;;  %v3048_v18 = vld [vmem:[#allocation10] sm:$0xff]  ;;  %v824_v24 = vsub.s32 3, %v2932_v20 }
 0x29e   : > { %1529 = vmatprep.subr.bf16.mxu1 %v2330_v38  ;;  %2077 = vmatprep.subr.bf16.mxu0 %v2331_v26  ;;  %v2360_v0 = vld [vmem:[#allocation8 + $0x14] ss:$28 sps:$4 sm:$0xff]   ;;  %v813_v25 = vrot.slane %v3048_v18, %v2935_v21  ;;  %v3056_v26 = vrot.slane %v3048_v18, %v2938_v23 }
 0x29f   : > { %v675_v36 = vadd.f32 %v665_v7, %v655_v30  ;;  %v674_v37 = vadd.f32 %v661_v9, %v654_v31  ;;  %v2368_v7 = vld [vmem:[#allocation8 + $0x324] ss:$28 sps:$4 sm:$0xff]   ;;  %v2371_v9 = vld [vmem:[#allocation8 + $0x2ec] ss:$28 sps:$4 sm:$0xff]  }
 0x2a1   : > { %1530 = vmatpush1.bf16.msra.mxu1 %v2328_v62  ;;  %2078 = vmatpush3.bf16.msra.mxu0 %v2332_v1  ;;  %v3033_v4 = vpack.c.bf16 %v675_v36, %v673_v34  ;;  %v3035_v40 = vpack.c.bf16 %v674_v37, %v672_v56 }
 0x2a2   : > { %1531 = vmatprep.subr.bf16.mxu1 %v2335_v32  ;;  %2079 = vmatprep.subr.bf16.mxu0 %v2336_v33 }
 0x2a3   : > { %1463 = vmatprep.mubr.bf16.mxu1 %v3033_v4  ;;  %1516 = vmatprep.mubr.bf16.mxu0 %v3033_v4 }
 0x2a4   : > { %1464 = vmatmul.mubr.bf16.gmra.mxu1 %v3035_v40  ;;  %1517 = vmatmul.mubr.bf16.gmra.mxu0 %v3035_v40 }
 0x2a5   : > { %1532 = vmatpush1.bf16.msra.mxu1 %v2333_v39  ;;  %2080 = vmatpush3.bf16.msra.mxu0 %v2337_v41 }
 0x2a6   : > { %1559 = vmatprep.mubr.bf16.mxu1 %v677_v17  ;;  %1612 = vmatprep.mubr.bf16.mxu0 %v677_v17  ;;  %v820_v17 = vsub.s32 2, %v2932_v20 }
 0x2a7   : > { %1533 = vmatprep.subr.bf16.mxu1 %v2340_v42  ;;  %2081 = vmatprep.subr.bf16.mxu0 %v2341_v43 }
 0x2a8   : > { %v821_v38 = vrot.slane %v3048_v18, %v820_v17 }
 0x2a9   : > { %1534 = vmatpush1.bf16.msra.mxu1 %v2338_v46  ;;  %2082 = vmatpush3.bf16.msra.mxu0 %v2342_v48 }
 0x2aa   : > { %1535 = vmatprep.subr.bf16.mxu1 %v2345_v49  ;;  %2083 = vmatprep.subr.bf16.mxu0 %v2346_v51 }
 0x2ad   : > { %1536 = vmatpush1.bf16.msra.mxu1 %v2343_v19  ;;  %2084 = vmatpush3.bf16.msra.mxu0 %v2347_v54 }
 0x2ae   : > { %1537 = vmatprep.subr.bf16.mxu1 %v2350_v35  ;;  %2085 = vmatprep.subr.bf16.mxu0 %v2351_v55 }
 0x2b1   : > { %1538 = vmatpush1.bf16.msra.mxu1 %v2348_v57  ;;  %2086 = vmatpush3.bf16.msra.mxu0 %v2352_v58 }
 0x2b2   : > { %1539 = vmatprep.subr.bf16.mxu1 %v2355_v61  ;;  %2087 = vmatprep.subr.bf16.mxu0 %v2356_v44 }
 0x2b5   : > { %1540 = vmatpush1.bf16.msra.mxu1 %v2353_v63  ;;  %2088 = vmatpush3.bf16.msra.mxu0 %v2357_v47 }
 0x2b6   : > { %1541 = vmatprep.subr.bf16.mxu1 %v2360_v0  ;;  %2089 = vmatprep.subr.bf16.mxu0 %v2361_v2 }
 0x2b9   : > { %1542 = vmatpush1.bf16.msra.mxu1 %v2358_v3  ;;  %2090 = vmatpush3.bf16.msra.mxu0 %v2362_v52 }
 0x2ba   : > { %1543 = vmatprep.subr.bf16.mxu1 %v2365_v5 }
 0x2bc   : > { %1613 = vmatmul.mubr.bf16.vlgmr.msra.gmra.mxu0 %v3027_v22 }
 0x2bd   : > { %1544 = vmatpush2.bf16.msra.mxu1 %v2363_v6  ;;  %1620 = vmatprep.mubr.bf16.mxu0 %v3033_v4 }
 0x2be   : > { %1545 = vmatprep.subr.bf16.mxu1 %v2368_v7 }
 0x2c1   : > { %1546 = vmatpush2.bf16.msra.mxu1 %v2366_v8 }
 0x2c2   : > { %1547 = vmatprep.subr.bf16.mxu1 %v2371_v9 }
 0x2c4   : > { %1621 = vmatmul.mubr.bf16.gmra.mxu0 %v3035_v40 }
 0x2c5   : > { %1548 = vmatpush2.bf16.msra.mxu1 %v2369_v10 }
 0x2c6   : > { %1549 = vmatprep.subr.bf16.mxu1 %v2374_v11 }
 0x2c9   : > { %1550 = vmatpush2.bf16.msra.mxu1 %v2372_v12 }
 0x2ca   : > { %1551 = vmatprep.subr.bf16.mxu1 %v2377_v59 }
 0x2cd   : > { %1552 = vmatpush2.bf16.msra.mxu1 %v2375_v50 }
 0x2ce   : > { %1553 = vmatprep.subr.bf16.mxu1 %v2380_v60 }
 0x2d1   : > { %1554 = vmatpush2.bf16.msra.mxu1 %v2378_v13 }
 0x2d2   : > { %1555 = vmatprep.subr.bf16.mxu1 %v2383_v14 }
 0x2d5   : > { %1556 = vmatpush2.bf16.msra.mxu1 %v2381_v15 }
 0x2d6   : > { %1557 = vmatprep.subr.bf16.mxu1 %v2386_v45 }
 0x2d9   : > { %1558 = vmatpush2.bf16.msra.mxu1 %v2384_v16 }
 0x2dc   : > { %1560 = vmatmul.mubr.bf16.vlgmr.msra.gmra.mxu1 %v3027_v22  ;;  %v3059_v22 = vrot.slane %v3048_v18, %v824_v24 }
 0x2dd   : > { %1569 = vmatprep.mubr.bf16.mxu1 %v3033_v4 }
 0x2e4   : > { %1570 = vmatmul.mubr.bf16.gmra.mxu1 %v3035_v40 }
 0x35c   : > { %v1455_v53 = vpop.f32.mrf.mxu1  ;;  %v1508_v27 = vpop.f32.mrf.mxu0 }
 0x35d   : > { %v1456_v28 = vadd.f32 %v1455_v53, %v813_v25  ;;  %v1509_v29 = vadd.f32 %v1508_v27, %v821_v38 }
 0x35e   : > { %v1457_v62 = vpop.f32.mrf.mxu1  ;;  %v1510_v1 = vpop.f32.mrf.mxu0 }
 0x35f   : > { %v1629_v30 = vsub.f32 0.0, %v1456_v28  ;;  %v1631_v31 = vsub.f32 0.0, %v1509_v29  ;;  %v1458_v32 = vadd.f32 %v1457_v62, %v3056_v26  ;;  %v1511_v21 = vadd.f32 %v1510_v1, %v3059_v22 }
 0x360   : > { %v1459_v33 = vpop.f32.mrf.mxu1  ;;  %v1512_v34 = vpop.f32.mrf.mxu0 }
 0x361   : > { %v1657_v36 = vmul.f32 1.442695, %v1629_v30  ;;  %v1661_v23 = vmul.f32 1.442695, %v1631_v31  ;;  %v1630_v56 = vsub.f32 0.0, %v1458_v32  ;;  %v1632_v37 = vsub.f32 0.0, %v1511_v21 }
 0x362   : > { %v1460_v4 = vadd.f32 %v1459_v33, %v813_v25  ;;  %v1513_v39 = vadd.f32 %v1512_v34, %v821_v38  ;;  %v1461_v40 = vpop.f32.mrf.mxu1  ;;  %v1514_v41 = vpop.f32.mrf.mxu0 }
 0x363   : > { %2395 = vpow2.f32 %v1657_v36  ;;  %v1659_v42 = vmul.f32 1.442695, %v1630_v56  ;;  %v1663_v43 = vmul.f32 1.442695, %v1632_v37  ;;  %v1462_v46 = vadd.f32 %v1461_v40, %v3056_v26 }
 0x364   : > { %2397 = vpow2.f32 %v1661_v23  ;;  %v1636_v48 = vsub.f32 0.0, %v1460_v4  ;;  %v1638_v49 = vsub.f32 0.0, %v1513_v39  ;;  %v1515_v51 = vadd.f32 %v1514_v41, %v3059_v22  ;;  %v1465_v19 = vpop.f32.mrf.mxu1  ;;  %v1518_v54 = vpop.f32.mrf.mxu0 }
 0x365   : > { %2399 = vpow2.f32 %v1659_v42  ;;  %v1637_v35 = vsub.f32 0.0, %v1462_v46  ;;  %v1466_v55 = vadd.f32 %v1465_v19, %v813_v25  ;;  %v1519_v57 = vadd.f32 %v1518_v54, %v821_v38 }
 0x366   : > { %2401 = vpow2.f32 %v1663_v43  ;;  %v1671_v58 = vmul.f32 1.442695, %v1636_v48  ;;  %v1675_v61 = vmul.f32 1.442695, %v1638_v49  ;;  %v1639_v44 = vsub.f32 0.0, %v1515_v51  ;;  %v1467_v63 = vpop.f32.mrf.mxu1  ;;  %v1520_v47 = vpop.f32.mrf.mxu0 }
 0x367   : > { %v1673_v0 = vmul.f32 1.442695, %v1637_v35  ;;  %v1643_v2 = vsub.f32 0.0, %v1466_v55  ;;  %v1645_v3 = vsub.f32 0.0, %v1519_v57  ;;  %v1468_v52 = vadd.f32 %v1467_v63, %v3056_v26 }
 0x368   : > { %2403 = vpow2.f32 %v1671_v58  ;;  %v1677_v5 = vmul.f32 1.442695, %v1639_v44  ;;  %v1521_v6 = vadd.f32 %v1520_v47, %v3059_v22  ;;  %v1469_v7 = vpop.f32.mrf.mxu1  ;;  %v1522_v8 = vpop.f32.mrf.mxu0  ;;  %v836_v41 = vsub.s32 6, %v2932_v20 }
 0x369   : > { %2405 = vpow2.f32 %v1675_v61  ;;  %v1685_v9 = vmul.f32 1.442695, %v1643_v2  ;;  %v1689_v10 = vmul.f32 1.442695, %v1645_v3  ;;  %v1644_v11 = vsub.f32 0.0, %v1468_v52 }
 0x36a   : > { %2407 = vpow2.f32 %v1673_v0  ;;  %v1646_v12 = vsub.f32 0.0, %v1521_v6  ;;  %v1470_v59 = vadd.f32 %v1469_v7, %v813_v25  ;;  %v1523_v50 = vadd.f32 %v1522_v8, %v821_v38  ;;  %v1471_v60 = vpop.f32.mrf.mxu1  ;;  %v1524_v13 = vpop.f32.mrf.mxu0 }
 0x36b   : > { %2409 = vpow2.f32 %v1677_v5  ;;  %v1687_v14 = vmul.f32 1.442695, %v1644_v11  ;;  %v1472_v15 = vadd.f32 %v1471_v60, %v3056_v26  ;;  %v1525_v45 = vadd.f32 %v1524_v13, %v3059_v22 }
 0x36c   : > { %2411 = vpow2.f32 %v1685_v9  ;;  %v1691_v16 = vmul.f32 1.442695, %v1646_v12  ;;  %v1650_v17 = vsub.f32 0.0, %v1470_v59  ;;  %v1652_v24 = vsub.f32 0.0, %v1523_v50 }
 0x36d   : > { %2413 = vpow2.f32 %v1689_v10  ;;  %v1651_v53 = vsub.f32 0.0, %v1472_v15  ;;  %v1653_v38 = vsub.f32 0.0, %v1525_v45  ;;  %v837_v55 = vrot.slane %v3048_v18, %v836_v41 }
 0x36e   : > { %2415 = vpow2.f32 %v1687_v14  ;;  %v1699_v27 = vmul.f32 1.442695, %v1650_v17  ;;  %v1703_v28 = vmul.f32 1.442695, %v1652_v24 }
 0x36f   : > { %2417 = vpow2.f32 %v1691_v16  ;;  %v1701_v25 = vmul.f32 1.442695, %v1651_v53  ;;  %v1705_v32 = vmul.f32 1.442695, %v1653_v38 }
 0x370   : > { %v2396_v29 = vpop.eup %2395  ;;  %2419 = vpow2.f32 %v1699_v27 }
 0x371   : > { %v2398_v62 = vpop.eup %2397  ;;  %v1713_v1 = vadd.f32 1.0, %v2396_v29  ;;  %2421 = vpow2.f32 %v1703_v28 }
 0x372   : > { %v2400_v26 = vpop.eup %2399  ;;  %v1715_v30 = vadd.f32 1.0, %v2398_v62  ;;  %2423 = vpow2.f32 %v1701_v25 }
 0x373   : > { %v2402_v22 = vpop.eup %2401  ;;  %2425 = vrcp.f32 %v1713_v1  ;;  %v1714_v31 = vadd.f32 1.0, %v2400_v26 }
 0x374   : > { %2427 = vrcp.f32 %v1715_v30  ;;  %v1716_v21 = vadd.f32 1.0, %v2402_v22 }
 0x375   : > { %v2404_v33 = vpop.eup %2403  ;;  %2429 = vrcp.f32 %v1714_v31 }
 0x376   : > { %v2406_v34 = vpop.eup %2405  ;;  %2431 = vrcp.f32 %v1716_v21  ;;  %v1720_v36 = vadd.f32 1.0, %v2404_v33 }
 0x377   : > { %v2408_v23 = vpop.eup %2407  ;;  %v1722_v56 = vadd.f32 1.0, %v2406_v34  ;;  %2433 = vpow2.f32 %v1705_v32 }
 0x378   : > { %v2410_v37 = vpop.eup %2409  ;;  %2435 = vrcp.f32 %v1720_v36  ;;  %v1721_v4 = vadd.f32 1.0, %v2408_v23 }
 0x379   : > { %v2412_v39 = vpop.eup %2411  ;;  %2437 = vrcp.f32 %v1722_v56  ;;  %v1723_v40 = vadd.f32 1.0, %v2410_v37  ;;  %v828_v37 = vsub.s32 4, %v2932_v20 }
 0x37a   : > { %v2414_v42 = vpop.eup %2413  ;;  %2439 = vrcp.f32 %v1721_v4  ;;  %v1727_v43 = vadd.f32 1.0, %v2412_v39  ;;  %v832_v39 = vsub.s32 5, %v2932_v20 }
 0x37b   : > { %v2416_v46 = vpop.eup %2415  ;;  %2441 = vrcp.f32 %v1723_v40  ;;  %v1729_v48 = vadd.f32 1.0, %v2414_v42  ;;  %v829_v42 = vrot.slane %v3048_v18, %v828_v37 }
 0x37c   : > { %v2418_v49 = vpop.eup %2417  ;;  %2443 = vrcp.f32 %v1727_v43  ;;  %v1728_v51 = vadd.f32 1.0, %v2416_v46  ;;  %v2091_v19 = vpop.f32.mrf.mxu0  ;;  %v833_v43 = vrot.slane %v3048_v18, %v832_v39 }
 0x37d   : > { %v2420_v54 = vpop.eup %2419  ;;  %2445 = vrcp.f32 %v1729_v48  ;;  %v1730_v35 = vadd.f32 1.0, %v2418_v49 }
 0x37e   : > { %v2422_v57 = vpop.eup %2421  ;;  %2447 = vrcp.f32 %v1728_v51  ;;  %v1734_v58 = vadd.f32 1.0, %v2420_v54  ;;  %v2092_v61 = vpop.f32.mrf.mxu0 }
 0x37f   : > { %v2424_v44 = vpop.eup %2423  ;;  %2449 = vrcp.f32 %v1730_v35  ;;  %v1736_v63 = vadd.f32 1.0, %v2422_v57  ;;  %v2093_v47 = vadd.f32 %v2092_v61, %v2091_v19 }
 0x380   : > { %v2426_v0 = vpop.eup %2425  ;;  %2451 = vrcp.f32 %v1734_v58  ;;  %v1735_v2 = vadd.f32 1.0, %v2424_v44  ;;  %v2094_v3 = vpop.f32.mrf.mxu0 }
 0x381   : > { %v2428_v52 = vpop.eup %2427  ;;  %1769 = vst [vmem:[%s3072_s21] sm:$0xff] %v2426_v0  ;;  %2453 = vrcp.f32 %v1736_v63  ;;  %v1615_v5 = vadd.f32 %v2093_v47, %v837_v55 }
 0x382   : > { %v2430_v6 = vpop.eup %2429  ;;  %1771 = vst [vmem:[%s3072_s21 + $0x10] sm:$0xff] %v2428_v52  ;;  %2455 = vrcp.f32 %v1735_v2  ;;  %v2095_v7 = vpop.f32.mrf.mxu0 }
 0x383   : > { %v2432_v8 = vpop.eup %2431  ;;  %1770 = vst [vmem:[%s3072_s21 + $0x8] sm:$0xff] %v2430_v6  ;;  %v1635_v9 = vsub.f32 0.0, %v1615_v5  ;;  %v2096_v10 = vadd.f32 %v2095_v7, %v2094_v3 }
 0x384   : > { %v2434_v11 = vpop.eup %2433  ;;  %1772 = vst [vmem:[%s3072_s21 + $0x18] sm:$0xff] %v2432_v8  ;;  %v2097_v12 = vpop.f32.mrf.mxu0 }
 0x385   : > { %v2436_v59 = vpop.eup %2435  ;;  %v1737_v50 = vadd.f32 1.0, %v2434_v11  ;;  %v1669_v60 = vmul.f32 1.442695, %v1635_v9  ;;  %v1618_v13 = vadd.f32 %v2096_v10, %v837_v55 }
 0x386   : > { %v2438_v14 = vpop.eup %2437  ;;  %1776 = vst [vmem:[%s3072_s21 + $0x38] sm:$0xff] %v2436_v59  ;;  %v2098_v15 = vpop.f32.mrf.mxu0 }
 0x387   : > { %v2440_v45 = vpop.eup %2439  ;;  %1778 = vst [vmem:[%s3072_s21 + $0x48] sm:$0xff] %v2438_v14  ;;  %2457 = vrcp.f32 %v1737_v50  ;;  %v1642_v16 = vsub.f32 0.0, %v1618_v13  ;;  %v2099_v17 = vadd.f32 %v2098_v15, %v2097_v12 }
 0x388   : > { %v2442_v24 = vpop.eup %2441  ;;  %1777 = vst [vmem:[%s3072_s21 + $0x40] sm:$0xff] %v2440_v45  ;;  %2459 = vpow2.f32 %v1669_v60  ;;  %v2100_v53 = vpop.f32.mrf.mxu0 }
 0x389   : > { %v2444_v27 = vpop.eup %2443  ;;  %1779 = vst [vmem:[%s3072_s21 + $0x50] sm:$0xff] %v2442_v24  ;;  %v1683_v28 = vmul.f32 1.442695, %v1642_v16  ;;  %v1623_v25 = vadd.f32 %v2099_v17, %v837_v55 }
 0x38a   : > { %v2446_v38 = vpop.eup %2445  ;;  %1783 = vst [vmem:[%s3072_s21 + $0x70] sm:$0xff] %v2444_v27  ;;  %v2101_v29 = vpop.f32.mrf.mxu0 }
 0x38b   : > { %v2448_v62 = vpop.eup %2447  ;;  %1785 = vst [vmem:[%s3072_s21 + $0x80] sm:$0xff] %v2446_v38  ;;  %2461 = vpow2.f32 %v1683_v28  ;;  %v1649_v1 = vsub.f32 0.0, %v1623_v25  ;;  %v2102_v26 = vadd.f32 %v2101_v29, %v2100_v53 }
 0x38c   : > { %v2450_v30 = vpop.eup %2449  ;;  %1784 = vst [vmem:[%s3072_s21 + $0x78] sm:$0xff] %v2448_v62 }
 0x38d   : > { %v2452_v22 = vpop.eup %2451  ;;  %1786 = vst [vmem:[%s3072_s21 + $0x88] sm:$0xff] %v2450_v30  ;;  %v1697_v31 = vmul.f32 1.442695, %v1649_v1  ;;  %v1626_v32 = vadd.f32 %v2102_v26, %v837_v55 }
 0x38e   : > { %v2454_v21 = vpop.eup %2453  ;;  %1790 = vst [vmem:[%s3072_s21 + $0xa8] sm:$0xff] %v2452_v22 }
 0x38f   : > { %v2456_v33 = vpop.eup %2455  ;;  %1792 = vst [vmem:[%s3072_s21 + $0xb8] sm:$0xff] %v2454_v21  ;;  %2463 = vpow2.f32 %v1697_v31  ;;  %v1656_v34 = vsub.f32 0.0, %v1626_v32 }
 0x390   : > { %1791 = vst [vmem:[%s3072_s21 + $0xb0] sm:$0xff] %v2456_v33 }
 0x391   : > { %v1711_v36 = vmul.f32 1.442695, %v1656_v34 }
 0x393   : > { %2465 = vpow2.f32 %v1711_v36 }
 0x394   : > { %v2458_v23 = vpop.eup %2457 }
 0x395   : > { %v2460_v56 = vpop.eup %2459  ;;  %1793 = vst [vmem:[%s3072_s21 + $0xc0] sm:$0xff] %v2458_v23 }
 0x396   : > { %v1719_v4 = vadd.f32 1.0, %v2460_v56 }
 0x398   : > { %v2462_v40 = vpop.eup %2461  ;;  %2467 = vrcp.f32 %v1719_v4 }
 0x399   : > { %v1726_v41 = vadd.f32 1.0, %v2462_v40 }
 0x39b   : > { %2469 = vrcp.f32 %v1726_v41 }
 0x39c   : > { %v2464_v46 = vpop.eup %2463  ;;  %v1561_v48 = vpop.f32.mrf.mxu1 }
 0x39d   : > { %v1733_v49 = vadd.f32 1.0, %v2464_v46  ;;  %v1562_v51 = vadd.f32 %v1561_v48, %v829_v42 }
 0x39e   : > { %v1563_v19 = vpop.f32.mrf.mxu1 }
 0x39f   : > { %2471 = vrcp.f32 %v1733_v49  ;;  %v1633_v54 = vsub.f32 0.0, %v1562_v51  ;;  %v1564_v35 = vadd.f32 %v1563_v19, %v833_v43 }
 0x3a0   : > { %v2466_v55 = vpop.eup %2465  ;;  %v1565_v57 = vpop.f32.mrf.mxu1 }
 0x3a1   : > { %v1740_v58 = vadd.f32 1.0, %v2466_v55  ;;  %v1665_v20 = vmul.f32 1.442695, %v1633_v54  ;;  %v1634_v61 = vsub.f32 0.0, %v1564_v35  ;;  %v1566_v44 = vadd.f32 %v1565_v57, %v829_v42 }
 0x3a2   : > { %v1567_v63 = vpop.f32.mrf.mxu1 }
 0x3a3   : > { %2473 = vrcp.f32 %v1740_v58  ;;  %v1667_v47 = vmul.f32 1.442695, %v1634_v61  ;;  %v1640_v0 = vsub.f32 0.0, %v1566_v44  ;;  %v1568_v18 = vadd.f32 %v1567_v63, %v833_v43 }
 0x3a4   : > { %2475 = vpow2.f32 %v1665_v20  ;;  %v1571_v2 = vpop.f32.mrf.mxu1 }
 0x3a5   : > { %v2468_v3 = vpop.eup %2467  ;;  %2477 = vpow2.f32 %v1667_v47  ;;  %v1679_v52 = vmul.f32 1.442695, %v1640_v0  ;;  %v1641_v5 = vsub.f32 0.0, %v1568_v18  ;;  %v1572_v6 = vadd.f32 %v1571_v2, %v829_v42 }
 0x3a6   : > { %1775 = vst [vmem:[%s3072_s21 + $0x30] sm:$0xff] %v2468_v3  ;;  %v1573_v7 = vpop.f32.mrf.mxu1 }
 0x3a7   : > { %2479 = vpow2.f32 %v1679_v52  ;;  %v1681_v8 = vmul.f32 1.442695, %v1641_v5  ;;  %v1647_v9 = vsub.f32 0.0, %v1572_v6  ;;  %v1574_v10 = vadd.f32 %v1573_v7, %v833_v43 }
 0x3a8   : > { %v2470_v11 = vpop.eup %2469  ;;  %v1575_v12 = vpop.f32.mrf.mxu1 }
 0x3a9   : > { %1782 = vst [vmem:[%s3072_s21 + $0x68] sm:$0xff] %v2470_v11  ;;  %2481 = vpow2.f32 %v1681_v8  ;;  %v1693_v59 = vmul.f32 1.442695, %v1647_v9  ;;  %v1648_v50 = vsub.f32 0.0, %v1574_v10  ;;  %v1576_v60 = vadd.f32 %v1575_v12, %v829_v42 }
 0x3aa   : > { %v1577_v13 = vpop.f32.mrf.mxu1 }
 0x3ab   : > { %2483 = vpow2.f32 %v1693_v59  ;;  %v1695_v14 = vmul.f32 1.442695, %v1648_v50  ;;  %v1654_v15 = vsub.f32 0.0, %v1576_v60  ;;  %v1578_v45 = vadd.f32 %v1577_v13, %v833_v43 }
 0x3ac   : > { %v2472_v16 = vpop.eup %2471 }
 0x3ad   : > { %1789 = vst [vmem:[%s3072_s21 + $0xa0] sm:$0xff] %v2472_v16  ;;  %2485 = vpow2.f32 %v1695_v14  ;;  %v1707_v17 = vmul.f32 1.442695, %v1654_v15  ;;  %v1655_v24 = vsub.f32 0.0, %v1578_v45 }
 0x3af   : > { %2487 = vpow2.f32 %v1707_v17  ;;  %v1709_v53 = vmul.f32 1.442695, %v1655_v24 }
 0x3b0   : > { %v2474_v27 = vpop.eup %2473 }
 0x3b1   : > { %v2476_v28 = vpop.eup %2475  ;;  %1796 = vst [vmem:[%s3072_s21 + $0xd8] sm:$0xff] %v2474_v27  ;;  %2489 = vpow2.f32 %v1709_v53 }
 0x3b2   : > { %v2478_v25 = vpop.eup %2477  ;;  %v1717_v38 = vadd.f32 1.0, %v2476_v28 }
 0x3b3   : > { %v1718_v29 = vadd.f32 1.0, %v2478_v25 }
 0x3b4   : > { %v2480_v62 = vpop.eup %2479  ;;  %2491 = vrcp.f32 %v1717_v38 }
 0x3b5   : > { %2493 = vrcp.f32 %v1718_v29  ;;  %v1724_v1 = vadd.f32 1.0, %v2480_v62 }
 0x3b6   : > { %v2482_v26 = vpop.eup %2481 }
 0x3b7   : > { %2495 = vrcp.f32 %v1724_v1  ;;  %v1725_v30 = vadd.f32 1.0, %v2482_v26 }
 0x3b8   : > { %v2484_v22 = vpop.eup %2483 }
 0x3b9   : > { %2497 = vrcp.f32 %v1725_v30  ;;  %v1731_v31 = vadd.f32 1.0, %v2484_v22 }
 0x3ba   : > { %v2486_v32 = vpop.eup %2485 }
 0x3bb   : > { %2499 = vrcp.f32 %v1731_v31  ;;  %v1732_v21 = vadd.f32 1.0, %v2486_v32 }
 0x3bc   : > { %v2488_v33 = vpop.eup %2487 }
 0x3bd   : > { %2501 = vrcp.f32 %v1732_v21  ;;  %v1738_v34 = vadd.f32 1.0, %v2488_v33 }
 0x3be   : > { %v2490_v36 = vpop.eup %2489 }
 0x3bf   : > { %2503 = vrcp.f32 %v1738_v34  ;;  %v1739_v23 = vadd.f32 1.0, %v2490_v36 }
 0x3c1   : > { %v2492_v56 = vpop.eup %2491  ;;  %2505 = vrcp.f32 %v1739_v23 }
 0x3c2   : > { %v2494_v37 = vpop.eup %2493  ;;  %1773 = vst [vmem:[%s3072_s21 + $0x20] sm:$0xff] %v2492_v56 }
 0x3c3   : > { %1774 = vst [vmem:[%s3072_s21 + $0x28] sm:$0xff] %v2494_v37 }
 0x3c4   : > { %v2496_v4 = vpop.eup %2495 }
 0x3c5   : > { %1780 = vst [vmem:[%s3072_s21 + $0x58] sm:$0xff] %v2496_v4 }
 0x3c6   : > { %v2498_v39 = vpop.eup %2497 }
 0x3c7   : > { %1781 = vst [vmem:[%s3072_s21 + $0x60] sm:$0xff] %v2498_v39 }
 0x3c8   : > { %v2500_v40 = vpop.eup %2499 }
 0x3c9   : > { %1787 = vst [vmem:[%s3072_s21 + $0x90] sm:$0xff] %v2500_v40 }
 0x3ca   : > { %v2502_v41 = vpop.eup %2501 }
 0x3cb   : > { %1788 = vst [vmem:[%s3072_s21 + $0x98] sm:$0xff] %v2502_v41 }
 0x3cc   : > { %v2504_v42 = vpop.eup %2503 }
 0x3cd   : > { %1794 = vst [vmem:[%s3072_s21 + $0xc8] sm:$0xff] %v2504_v42 }
 0x3ce   : > { %v2506_v43 = vpop.eup %2505 }
 0x3cf   : > { %1795 = vst [vmem:[%s3072_s21 + $0xd0] sm:$0xff] %v2506_v43 }
 0x3d0   : > { %2652 = shalt.err (!%p2649_p1)
}
 0x3d1   : > { %s2653_s9 = scalar_lea.hbm %s3109_s15, 3584  ;;  %s2657_s20 = scalar_lea.hbm %s3163_s7, 7168 }
 0x3d2   : > { %p2654_p10 = scmp.ne.s32.totalorder %s3109_s15, %s2653_s9  ;;  %p2658_p11 = scmp.lt.s32.totalorder %s3109_s15, %s3163_s7 }
 0x3d3   : > { %p2659_p2 = scmp.lt.s32.totalorder %s2657_s20, %s2653_s9 }
 0x3d4   : > { %p2655_p8 = pnand %p2654_p10, %p3183_p12 }
 0x3d5   : > { %p2660_p3 = por %p2659_p2, %p2658_p11 }
 0x3d6   : > { %p2656_p13 = pneg %p2655_p8 }
 0x3d8   : > { %p2661_p4 = pnand %p2660_p3, %p2656_p13 }
 0x3da   : > { %2664 = shalt.err (!%p2661_p4)
}
 0x3db   : > { %s2726_s12 = smov 896   ;;  %s2727_s23 = smov 56  }
 0x3dc   : > { %2123 = dma.vmem_to_hbm [thread:$0]  (%p3183_p12), %s3112_s18, 3584, %s3109_s15, %s1798_s1, %s2726_s12, %s2726_s12, %s2727_s23  }
 0x3dd PF: > { %s1827_s28 = sand.u32 1, %s2699_s24   ;;  %p3184_p6 = scmp.ne.s32.totalorder %s3170_s8, 0 }
 0x3de   : > { %p3185_p7 = scmp.ge.s32.totalorder %s2711_s27, 2  ;;  %s1828_s16 = scalar_lea.sflag [#allocation4], %s1827_s28 }
 0x3e0   : > { %p2143_p9 = pnand %p3185_p7, %p3184_p6 }
 0x3e2   : > { %p2144_p0 = pneg %p2143_p9 }
 0x3e4   : > { %2694 = dma.done.wait (%p2144_p0), %s1828_s16, 3584  }
 0x3e5   : > { %2696 = vsyncadd (%p2144_p0), %s1828_s16, 4294963712  ;;  %p22_p5 = scmp.ge.s32.totalorder %s2856_s22, 4   ;;  %s3186_s24 = smov %s2703_s25 }
 0x3e6   : > { %s3187_s25 = smov %s2707_s26  ;;  %s3188_s26 = smov %s2865_s29 }
 0x3e7   : > { %s3189_s27 = smov %s2856_s22  ;;  %24 = sbr.rel (!%p22_p5) target bundleno = 9 (0x9), region = 109 }
 0x3ec   :  { %1833 = vsyncpa [#allocation3], 1 }
 0x3ed   :  { %1835 = vsyncpa [#allocation3 + $0x1], 1 }
 0x3ee   :  { %1836 = vsyncpa [#allocation6], 1 }
 0x3ef   :  { %1837 = vsyncpa [#allocation9], 1 }
 0x3f0   :  { %1838 = vsyncpa [#allocation4], 1 }
 0x3f1   :  { %1840 = vsyncpa [#allocation4 + $0x1], 1 }

</bundles_post_ra>
